<compile_context>
chip_gen: v7x
topology: tpu7x:2x2x1
jax: 0.10.0
libtpu: 0.0.40
codegen_flags: <defaults>
</compile_context>

<pallas_src>
import numpy as np
import jax
import jax.numpy as jnp
from jax.experimental import pallas as pl
from jax.experimental.pallas import tpu as pltpu

EPS = 1e-5  # GroupLayerNorm epsilon


def _make_resblock_kernel(num_groups: int, group_size: int):
    """Fused ResBlock kernel for contiguous, equal-size, 128-lane-aligned groups."""
    inv_c = np.float32(1.0 / group_size)  # compile-time constant (no in-kernel divides)

    def kernel(x_ref, w_in_ref, b_in_ref, w_out_ref, b_out_ref, o_ref, acc_ref):
        x = x_ref[...]                                                    # (TB, E) f32

        # --- lin_in: SparseLinear as masked dense matmul (bf16 MXU, f32 acc) ---
        h = jnp.dot(x.astype(w_in_ref.dtype), w_in_ref[...],
                    preferred_element_type=jnp.float32) + b_in_ref[...]   # (TB, H) f32

        # --- lin_out accumulator: start from residual + bias (dropout p=0) ---
        acc_ref[...] = x + b_out_ref[...]                                 # (TB, E) f32

        # --- GroupLayerNorm + ELU + partial lin_out, one contiguous group at a
        # time.  Groups are contiguous 128-aligned lane blocks (channel_groups
        # == arange(H)//C), so stats are plain lane reductions; each group's
        # activation is consumed immediately by a (TB,C)x(C,E) MXU partial
        # matmul, so no (TB,H) scratch round trip and MXU/VPU/EUP overlap.
        for g in range(num_groups):
            lo = g * group_size
            blk = h[:, lo:lo + group_size]                                # (TB, C)
            mean = jnp.sum(blk, axis=-1, keepdims=True) * inv_c           # (TB, 1)
            diff = blk - mean                                             # two-pass var
            var = jnp.sum(diff * diff, axis=-1, keepdims=True) * inv_c
            hn = diff * jax.lax.rsqrt(var + EPS)
            # ELU(alpha=1).  exp-1 instead of expm1 for guaranteed Mosaic lowering.
            act = jnp.where(hn > 0, hn, jnp.exp(hn) - 1.0)
            acc_ref[...] += jnp.dot(act.astype(w_out_ref.dtype),
                                    w_out_ref[lo:lo + group_size, :],
                                    preferred_element_type=jnp.float32)

        o_ref[...] = acc_ref[...].astype(o_ref.dtype)

    return kernel


def _pick_tile_b(batch: int, requested: int) -> int:
    """Pick a batch tile: multiple of 8, divides B if possible (avoids a padded
    copy of x), and prefers num_tiles >= 2 so v7x megacore has work to split."""
    t_max = max(8, min(requested, batch))
    t_max -= t_max % 8
    if t_max < 8:
        return 8                                   # tiny batch -> single padded tile
    divisors = [t for t in range(t_max, 7, -8) if batch % t == 0]
    if not divisors:
        return t_max                               # no clean divisor -> pad path
    multi = [t for t in divisors if batch // t >= 2]
    return multi[0] if multi else divisors[0]


def resblock_forward(x, w_in, b_in, w_out, b_out, channel_groups, *,
                     tile_b=128, out_dtype=jnp.float32):
    """Fused ResBlock forward.  Weights may be f32 or bf16 (bf16 recommended)."""
    B, E = x.shape
    H = w_in.shape[1]
    assert w_in.shape == (E, H) and w_out.shape == (H, E)
    assert b_in.shape == (1, H) and b_out.shape == (1, E)

    cg = np.asarray(channel_groups)
    num_groups = int(cg.max()) + 1
    assert H % num_groups == 0, "channel groups must be equal-sized"
    group_size = H // num_groups
    assert np.array_equal(cg, np.arange(H) // group_size), (
        "kernel assumes contiguous, equal-size channel groups "
        "(channel_groups == arange(H) // C)")
    # Keep per-group slices lane-aligned vreg views (pad channels upstream if not).
    # TODO(synk): vectorized segmented-reduction path for C % 128 != 0 / huge G.
    assert group_size % 128 == 0, (
        "group_size (channels per node) must be a multiple of 128 lanes")

    # Batch tiling: prefer a tile that divides B (no padded copy of x).
    tile_b = _pick_tile_b(B, tile_b)
    num_tiles = pl.cdiv(B, tile_b)
    b_pad = num_tiles * tile_b
    x_in = x if b_pad == B else jnp.pad(x, ((0, b_pad - B), (0, 0)))

    kernel = _make_resblock_kernel(num_groups, group_size)

    itm_w = jnp.dtype(w_in.dtype).itemsize
    itm_out = jnp.dtype(out_dtype).itemsize

    # VMEM budget from actual shapes: 2x-buffered resident weights/biases,
    # 2x-buffered streamed x/out tiles, plus f32 accumulator + h temporaries.
    resident = (E * H + H * E) * itm_w + (H + E) * 4
    streamed = tile_b * E * 4 + tile_b * E * itm_out
    scratch = tile_b * E * 4 + 2 * tile_b * H * 4
    vmem_limit = int(min(max(2 * (2 * resident + 2 * streamed + scratch), 32 << 20),
                         112 << 20))

    cost = pl.CostEstimate(
        flops=4 * b_pad * E * H,                       # two matmuls, 2*M*K*N each
        transcendentals=b_pad * (H + num_groups),      # ELU exp + per-group rsqrt
        bytes_accessed=(b_pad * E * 4 + b_pad * E * itm_out
                        + 2 * E * H * itm_w + (H + E) * 4),
    )

    out = pl.pallas_call(
        kernel,
        out_shape=jax.ShapeDtypeStruct((b_pad, E), out_dtype),
        grid=(num_tiles,),
        in_specs=[
            pl.BlockSpec((tile_b, E), lambda i: (i, 0)),   # x: streamed per batch tile
            pl.BlockSpec((E, H), lambda i: (0, 0)),        # w_in: resident in VMEM
            pl.BlockSpec((1, H), lambda i: (0, 0)),        # b_in: resident
            pl.BlockSpec((H, E), lambda i: (0, 0)),        # w_out: resident
            pl.BlockSpec((1, E), lambda i: (0, 0)),        # b_out: resident
        ],
        out_specs=pl.BlockSpec((tile_b, E), lambda i: (i, 0)),
        scratch_shapes=[
            pltpu.VMEM((tile_b, E), jnp.float32),          # f32 lin_out accumulator
        ],
        compiler_params=pltpu.CompilerParams(
            dimension_semantics=("parallel",),     # shard batch tiles across TCs (v7x)
            vmem_limit_bytes=vmem_limit,
        ),
        cost_estimate=cost,
    )(x_in, w_in, b_in, w_out, b_out)

    return out if b_pad == B else out[:B]


def resblock_reference(x, w_in, b_in, w_out, b_out, channel_groups):
    """Pure-JAX reference mirroring the kernel's mixed precision:
    matmul operands cast to the weight dtype (bf16) with f32 accumulation,
    all normalization / ELU math in f32."""
    f32 = jnp.float32
    hp = jax.lax.Precision.HIGHEST
    cg = np.asarray(channel_groups)
    G = int(cg.max()) + 1
    H = w_in.shape[1]
    C = H // G
    B = x.shape[0]

    xw = x.astype(w_in.dtype).astype(f32)
    h = jnp.dot(xw, w_in.astype(f32), precision=hp) + b_in
    hg = h.reshape(B, G, C)
    mean = jnp.mean(hg, axis=-1, keepdims=True)
    var = jnp.mean((hg - mean) ** 2, axis=-1, keepdims=True)
    hg = (hg - mean) * jax.lax.rsqrt(var + EPS)
    h = hg.reshape(B, H)
    h = jnp.where(h > 0, h, jnp.exp(h) - 1.0)                 # ELU(alpha=1)
    hw = h.astype(w_out.dtype).astype(f32)
    out = jnp.dot(hw, w_out.astype(f32), precision=hp) + b_out
    return out + x


if __name__ == "__main__":
    # Synthetic shapes consistent with the module: B edge-feature rows, E edge
    # features in/out, hidden = NODES nodes x C channels.  E and H are
    # lane-aligned, C == 128 so group slices are vreg-aligned, and B is chosen
    # so tile_b=128 divides it and yields num_tiles=2 (megacore-friendly).
    B, E, NODES, C = 256, 128, 4, 128
    H = NODES * C                     # hidden width (w_in_size[1])
    channel_groups = np.arange(H) // C

    key = jax.random.PRNGKey(0)
    k_wi, k_wo, k_bi, k_bo, k_mi, k_mo, k_x = jax.random.split(key, 7)

    # Deterministic sparse connectivity masks (the SparseLinear "indices").
    mask_in = (jax.random.uniform(k_mi, (E, H)) < 0.5).astype(jnp.float32)
    mask_out = (jax.random.uniform(k_mo, (H, E)) < 0.5).astype(jnp.float32)

    # Xavier-style init on the nonzero pattern; bias=True.  Weights stored in
    # bfloat16 (halves weight HBM/VMEM traffic; f32 accumulation in-kernel).
    w_in = ((jax.random.normal(k_wi, (E, H)) * (2.0 / (E + H)) ** 0.5) * mask_in
            ).astype(jnp.bfloat16)
    w_out = ((jax.random.normal(k_wo, (H, E)) * (2.0 / (H + E)) ** 0.5) * mask_out
             ).astype(jnp.bfloat16)
    b_in = (jax.random.normal(k_bi, (1, H)) * 0.01).astype(jnp.float32)
    b_out = (jax.random.normal(k_bo, (1, E)) * 0.01).astype(jnp.float32)

    x = jax.random.normal(k_x, (B, E), dtype=jnp.float32)

    out = resblock_forward(x, w_in, b_in, w_out, b_out, channel_groups, tile_b=128)
    out = jax.block_until_ready(out)

    ref = resblock_reference(x, w_in, b_in, w_out, b_out, channel_groups)
    assert out.shape == x.shape
    assert out.dtype == jnp.float32
    # bf16 matmul operands in both kernel and reference -> only accumulation
    # order / transcendental-ulp differences remain.
    assert jnp.allclose(out, ref, atol=5e-3, rtol=5e-3), "mismatch vs reference"

    print("KERNEL_OK")
</pallas_src>

<mosaic_0001>
module attributes {stable_mosaic.version = 11 : i64} {
  func.func @kernel(%arg0: i32, %arg1: memref<128x128xf32, #tpu.memory_space<vmem>>, %arg2: memref<128x512xbf16, #tpu.memory_space<vmem>>, %arg3: memref<1x512xf32, #tpu.memory_space<vmem>>, %arg4: memref<512x128xbf16, #tpu.memory_space<vmem>>, %arg5: memref<1x128xf32, #tpu.memory_space<vmem>>, %arg6: memref<128x128xf32, #tpu.memory_space<vmem>>, %arg7: memref<128x128xf32, #tpu.memory_space<vmem>>) attributes {dimension_semantics = [#tpu.dimension_semantics<parallel>], iteration_bounds = array<i64: 2>, scalar_prefetch = 0 : i64, scratch_operands = 1 : i64, tpu.core_type = #tpu.core_type<tc>, window_params = [{transform_indices = @transform_0, window_bounds = array<i64: 128, 128>}, {pipeline_mode = #tpu.pipeline_mode<synchronous>, transform_indices = @transform_1, window_bounds = array<i64: 128, 512>}, {pipeline_mode = #tpu.pipeline_mode<synchronous>, transform_indices = @transform_2, window_bounds = array<i64: 1, 512>}, {pipeline_mode = #tpu.pipeline_mode<synchronous>, transform_indices = @transform_3, window_bounds = array<i64: 512, 128>}, {pipeline_mode = #tpu.pipeline_mode<synchronous>, transform_indices = @transform_4, window_bounds = array<i64: 1, 128>}, {transform_indices = @transform_5, window_bounds = array<i64: 128, 128>}]} {
    %c0 = arith.constant 0 : index
    %c0_0 = arith.constant 0 : index
    %0 = vector.load %arg1[%c0, %c0_0] : memref<128x128xf32, #tpu.memory_space<vmem>>, vector<128x128xf32>
    %1 = arith.truncf %0 : vector<128x128xf32> to vector<128x128xbf16>
    %c0_1 = arith.constant 0 : index
    %c0_2 = arith.constant 0 : index
    %2 = vector.load %arg2[%c0_1, %c0_2] : memref<128x512xbf16, #tpu.memory_space<vmem>>, vector<128x512xbf16>
    %cst = arith.constant dense<0.000000e+00> : vector<128x512xf32>
    %3 = tpu.matmul %1, %2, %cst {dimension_numbers = #tpu.dot_dimension_numbers<[1], [0], [0], [1], [0, 0, 1, 1], [], []>} : vector<128x128xbf16>, vector<128x512xbf16>, vector<128x512xf32> -> vector<128x512xf32>
    %c0_3 = arith.constant 0 : index
    %c0_4 = arith.constant 0 : index
    %4 = vector.load %arg3[%c0_3, %c0_4] : memref<1x512xf32, #tpu.memory_space<vmem>>, vector<1x512xf32>
    %5 = vector.broadcast %4 : vector<1x512xf32> to vector<128x512xf32>
    %6 = arith.addf %3, %5 : vector<128x512xf32>
    %c0_5 = arith.constant 0 : index
    %c0_6 = arith.constant 0 : index
    %7 = vector.load %arg5[%c0_5, %c0_6] : memref<1x128xf32, #tpu.memory_space<vmem>>, vector<1x128xf32>
    %8 = vector.broadcast %7 : vector<1x128xf32> to vector<128x128xf32>
    %9 = arith.addf %0, %8 : vector<128x128xf32>
    %c0_7 = arith.constant 0 : index
    %c0_8 = arith.constant 0 : index
    %10 = vector.load %arg7[%c0_7, %c0_8] : memref<128x128xf32, #tpu.memory_space<vmem>>, vector<128x128xf32>
    tpu.vector_store %arg7[%c0_7, %c0_8], %9 {strides = array<i32>} : memref<128x128xf32, #tpu.memory_space<vmem>>, vector<128x128xf32>,
    %11 = vector.extract_strided_slice %6 {offsets = [0, 0], sizes = [128, 128], strides = [1, 1]} : vector<128x512xf32> to vector<128x128xf32>
    %cst_9 = arith.constant dense<0.000000e+00> : vector<128xf32>
    %12 = vector.multi_reduction <add>, %11, %cst_9 [1] : vector<128x128xf32> to vector<128xf32>
    %13 = vector.shape_cast %12 : vector<128xf32> to vector<128x1xf32>
    %cst_10 = arith.constant 7.812500e-03 : f32
    %14 = vector.broadcast %cst_10 : f32 to vector<128x1xf32>
    %15 = arith.mulf %13, %14 : vector<128x1xf32>
    %16 = vector.broadcast %15 : vector<128x1xf32> to vector<128x128xf32>
    %17 = arith.subf %11, %16 : vector<128x128xf32>
    %18 = arith.mulf %17, %17 : vector<128x128xf32>
    %cst_11 = arith.constant dense<0.000000e+00> : vector<128xf32>
    %19 = vector.multi_reduction <add>, %18, %cst_11 [1] : vector<128x128xf32> to vector<128xf32>
    %20 = vector.shape_cast %19 : vector<128xf32> to vector<128x1xf32>
    %cst_12 = arith.constant 7.812500e-03 : f32
    %21 = vector.broadcast %cst_12 : f32 to vector<128x1xf32>
    %22 = arith.mulf %20, %21 : vector<128x1xf32>
    %cst_13 = arith.constant 9.99999974E-6 : f32
    %23 = vector.broadcast %cst_13 : f32 to vector<128x1xf32>
    %24 = arith.addf %22, %23 : vector<128x1xf32>
    %25 = math.rsqrt %24 : vector<128x1xf32>
    %26 = vector.broadcast %25 : vector<128x1xf32> to vector<128x128xf32>
    %27 = arith.mulf %17, %26 : vector<128x128xf32>
    %cst_14 = arith.constant 0.000000e+00 : f32
    %28 = vector.broadcast %cst_14 : f32 to vector<128x128xf32>
    %29 = arith.cmpf ogt, %27, %28 : vector<128x128xf32>
    %30 = math.exp %27 : vector<128x128xf32>
    %cst_15 = arith.constant 1.000000e+00 : f32
    %31 = vector.broadcast %cst_15 : f32 to vector<128x128xf32>
    %32 = arith.subf %30, %31 : vector<128x128xf32>
    %33 = arith.select %29, %27, %32 : vector<128x128xi1>, vector<128x128xf32>
    %c0_16 = arith.constant 0 : index
    %c0_17 = arith.constant 0 : index
    %34 = vector.load %arg7[%c0_16, %c0_17] : memref<128x128xf32, #tpu.memory_space<vmem>>, vector<128x128xf32>
    %35 = arith.truncf %33 : vector<128x128xf32> to vector<128x128xbf16>
    %c0_18 = arith.constant 0 : index
    %c0_19 = arith.constant 0 : index
    %36 = vector.load %arg4[%c0_18, %c0_19] : memref<512x128xbf16, #tpu.memory_space<vmem>>, vector<128x128xbf16>
    %cst_20 = arith.constant dense<0.000000e+00> : vector<128x128xf32>
    %37 = tpu.matmul %35, %36, %cst_20 {dimension_numbers = #tpu.dot_dimension_numbers<[1], [0], [0], [1], [0, 0, 1, 1], [], []>} : vector<128x128xbf16>, vector<128x128xbf16>, vector<128x128xf32> -> vector<128x128xf32>
    %38 = arith.addf %34, %37 : vector<128x128xf32>
    %c0_21 = arith.constant 0 : index
    %c0_22 = arith.constant 0 : index
    %39 = vector.load %arg7[%c0_21, %c0_22] : memref<128x128xf32, #tpu.memory_space<vmem>>, vector<128x128xf32>
    tpu.vector_store %arg7[%c0_21, %c0_22], %38 {strides = array<i32>} : memref<128x128xf32, #tpu.memory_space<vmem>>, vector<128x128xf32>,
    %40 = vector.extract_strided_slice %6 {offsets = [0, 128], sizes = [128, 128], strides = [1, 1]} : vector<128x512xf32> to vector<128x128xf32>
    %cst_23 = arith.constant dense<0.000000e+00> : vector<128xf32>
    %41 = vector.multi_reduction <add>, %40, %cst_23 [1] : vector<128x128xf32> to vector<128xf32>
    %42 = vector.shape_cast %41 : vector<128xf32> to vector<128x1xf32>
    %cst_24 = arith.constant 7.812500e-03 : f32
    %43 = vector.broadcast %cst_24 : f32 to vector<128x1xf32>
    %44 = arith.mulf %42, %43 : vector<128x1xf32>
    %45 = vector.broadcast %44 : vector<128x1xf32> to vector<128x128xf32>
    %46 = arith.subf %40, %45 : vector<128x128xf32>
    %47 = arith.mulf %46, %46 : vector<128x128xf32>
    %cst_25 = arith.constant dense<0.000000e+00> : vector<128xf32>
    %48 = vector.multi_reduction <add>, %47, %cst_25 [1] : vector<128x128xf32> to vector<128xf32>
    %49 = vector.shape_cast %48 : vector<128xf32> to vector<128x1xf32>
    %cst_26 = arith.constant 7.812500e-03 : f32
    %50 = vector.broadcast %cst_26 : f32 to vector<128x1xf32>
    %51 = arith.mulf %49, %50 : vector<128x1xf32>
    %cst_27 = arith.constant 9.99999974E-6 : f32
    %52 = vector.broadcast %cst_27 : f32 to vector<128x1xf32>
    %53 = arith.addf %51, %52 : vector<128x1xf32>
    %54 = math.rsqrt %53 : vector<128x1xf32>
    %55 = vector.broadcast %54 : vector<128x1xf32> to vector<128x128xf32>
    %56 = arith.mulf %46, %55 : vector<128x128xf32>
    %cst_28 = arith.constant 0.000000e+00 : f32
    %57 = vector.broadcast %cst_28 : f32 to vector<128x128xf32>
    %58 = arith.cmpf ogt, %56, %57 : vector<128x128xf32>
    %59 = math.exp %56 : vector<128x128xf32>
    %cst_29 = arith.constant 1.000000e+00 : f32
    %60 = vector.broadcast %cst_29 : f32 to vector<128x128xf32>
    %61 = arith.subf %59, %60 : vector<128x128xf32>
    %62 = arith.select %58, %56, %61 : vector<128x128xi1>, vector<128x128xf32>
    %c0_30 = arith.constant 0 : index
    %c0_31 = arith.constant 0 : index
    %63 = vector.load %arg7[%c0_30, %c0_31] : memref<128x128xf32, #tpu.memory_space<vmem>>, vector<128x128xf32>
    %64 = arith.truncf %62 : vector<128x128xf32> to vector<128x128xbf16>
    %c128 = arith.constant 128 : index
    %c0_32 = arith.constant 0 : index
    %65 = vector.load %arg4[%c128, %c0_32] : memref<512x128xbf16, #tpu.memory_space<vmem>>, vector<128x128xbf16>
    %cst_33 = arith.constant dense<0.000000e+00> : vector<128x128xf32>
    %66 = tpu.matmul %64, %65, %cst_33 {dimension_numbers = #tpu.dot_dimension_numbers<[1], [0], [0], [1], [0, 0, 1, 1], [], []>} : vector<128x128xbf16>, vector<128x128xbf16>, vector<128x128xf32> -> vector<128x128xf32>
    %67 = arith.addf %63, %66 : vector<128x128xf32>
    %c0_34 = arith.constant 0 : index
    %c0_35 = arith.constant 0 : index
    %68 = vector.load %arg7[%c0_34, %c0_35] : memref<128x128xf32, #tpu.memory_space<vmem>>, vector<128x128xf32>
    tpu.vector_store %arg7[%c0_34, %c0_35], %67 {strides = array<i32>} : memref<128x128xf32, #tpu.memory_space<vmem>>, vector<128x128xf32>,
    %69 = vector.extract_strided_slice %6 {offsets = [0, 256], sizes = [128, 128], strides = [1, 1]} : vector<128x512xf32> to vector<128x128xf32>
    %cst_36 = arith.constant dense<0.000000e+00> : vector<128xf32>
    %70 = vector.multi_reduction <add>, %69, %cst_36 [1] : vector<128x128xf32> to vector<128xf32>
    %71 = vector.shape_cast %70 : vector<128xf32> to vector<128x1xf32>
    %cst_37 = arith.constant 7.812500e-03 : f32
    %72 = vector.broadcast %cst_37 : f32 to vector<128x1xf32>
    %73 = arith.mulf %71, %72 : vector<128x1xf32>
    %74 = vector.broadcast %73 : vector<128x1xf32> to vector<128x128xf32>
    %75 = arith.subf %69, %74 : vector<128x128xf32>
    %76 = arith.mulf %75, %75 : vector<128x128xf32>
    %cst_38 = arith.constant dense<0.000000e+00> : vector<128xf32>
    %77 = vector.multi_reduction <add>, %76, %cst_38 [1] : vector<128x128xf32> to vector<128xf32>
    %78 = vector.shape_cast %77 : vector<128xf32> to vector<128x1xf32>
    %cst_39 = arith.constant 7.812500e-03 : f32
    %79 = vector.broadcast %cst_39 : f32 to vector<128x1xf32>
    %80 = arith.mulf %78, %79 : vector<128x1xf32>
    %cst_40 = arith.constant 9.99999974E-6 : f32
    %81 = vector.broadcast %cst_40 : f32 to vector<128x1xf32>
    %82 = arith.addf %80, %81 : vector<128x1xf32>
    %83 = math.rsqrt %82 : vector<128x1xf32>
    %84 = vector.broadcast %83 : vector<128x1xf32> to vector<128x128xf32>
    %85 = arith.mulf %75, %84 : vector<128x128xf32>
    %cst_41 = arith.constant 0.000000e+00 : f32
    %86 = vector.broadcast %cst_41 : f32 to vector<128x128xf32>
    %87 = arith.cmpf ogt, %85, %86 : vector<128x128xf32>
    %88 = math.exp %85 : vector<128x128xf32>
    %cst_42 = arith.constant 1.000000e+00 : f32
    %89 = vector.broadcast %cst_42 : f32 to vector<128x128xf32>
    %90 = arith.subf %88, %89 : vector<128x128xf32>
    %91 = arith.select %87, %85, %90 : vector<128x128xi1>, vector<128x128xf32>
    %c0_43 = arith.constant 0 : index
    %c0_44 = arith.constant 0 : index
    %92 = vector.load %arg7[%c0_43, %c0_44] : memref<128x128xf32, #tpu.memory_space<vmem>>, vector<128x128xf32>
    %93 = arith.truncf %91 : vector<128x128xf32> to vector<128x128xbf16>
    %c256 = arith.constant 256 : index
    %c0_45 = arith.constant 0 : index
    %94 = vector.load %arg4[%c256, %c0_45] : memref<512x128xbf16, #tpu.memory_space<vmem>>, vector<128x128xbf16>
    %cst_46 = arith.constant dense<0.000000e+00> : vector<128x128xf32>
    %95 = tpu.matmul %93, %94, %cst_46 {dimension_numbers = #tpu.dot_dimension_numbers<[1], [0], [0], [1], [0, 0, 1, 1], [], []>} : vector<128x128xbf16>, vector<128x128xbf16>, vector<128x128xf32> -> vector<128x128xf32>
    %96 = arith.addf %92, %95 : vector<128x128xf32>
    %c0_47 = arith.constant 0 : index
    %c0_48 = arith.constant 0 : index
    %97 = vector.load %arg7[%c0_47, %c0_48] : memref<128x128xf32, #tpu.memory_space<vmem>>, vector<128x128xf32>
    tpu.vector_store %arg7[%c0_47, %c0_48], %96 {strides = array<i32>} : memref<128x128xf32, #tpu.memory_space<vmem>>, vector<128x128xf32>,
    %98 = vector.extract_strided_slice %6 {offsets = [0, 384], sizes = [128, 128], strides = [1, 1]} : vector<128x512xf32> to vector<128x128xf32>
    %cst_49 = arith.constant dense<0.000000e+00> : vector<128xf32>
    %99 = vector.multi_reduction <add>, %98, %cst_49 [1] : vector<128x128xf32> to vector<128xf32>
    %100 = vector.shape_cast %99 : vector<128xf32> to vector<128x1xf32>
    %cst_50 = arith.constant 7.812500e-03 : f32
    %101 = vector.broadcast %cst_50 : f32 to vector<128x1xf32>
    %102 = arith.mulf %100, %101 : vector<128x1xf32>
    %103 = vector.broadcast %102 : vector<128x1xf32> to vector<128x128xf32>
    %104 = arith.subf %98, %103 : vector<128x128xf32>
    %105 = arith.mulf %104, %104 : vector<128x128xf32>
    %cst_51 = arith.constant dense<0.000000e+00> : vector<128xf32>
    %106 = vector.multi_reduction <add>, %105, %cst_51 [1] : vector<128x128xf32> to vector<128xf32>
    %107 = vector.shape_cast %106 : vector<128xf32> to vector<128x1xf32>
    %cst_52 = arith.constant 7.812500e-03 : f32
    %108 = vector.broadcast %cst_52 : f32 to vector<128x1xf32>
    %109 = arith.mulf %107, %108 : vector<128x1xf32>
    %cst_53 = arith.constant 9.99999974E-6 : f32
    %110 = vector.broadcast %cst_53 : f32 to vector<128x1xf32>
    %111 = arith.addf %109, %110 : vector<128x1xf32>
    %112 = math.rsqrt %111 : vector<128x1xf32>
    %113 = vector.broadcast %112 : vector<128x1xf32> to vector<128x128xf32>
    %114 = arith.mulf %104, %113 : vector<128x128xf32>
    %cst_54 = arith.constant 0.000000e+00 : f32
    %115 = vector.broadcast %cst_54 : f32 to vector<128x128xf32>
    %116 = arith.cmpf ogt, %114, %115 : vector<128x128xf32>
    %117 = math.exp %114 : vector<128x128xf32>
    %cst_55 = arith.constant 1.000000e+00 : f32
    %118 = vector.broadcast %cst_55 : f32 to vector<128x128xf32>
    %119 = arith.subf %117, %118 : vector<128x128xf32>
    %120 = arith.select %116, %114, %119 : vector<128x128xi1>, vector<128x128xf32>
    %c0_56 = arith.constant 0 : index
    %c0_57 = arith.constant 0 : index
    %121 = vector.load %arg7[%c0_56, %c0_57] : memref<128x128xf32, #tpu.memory_space<vmem>>, vector<128x128xf32>
    %122 = arith.truncf %120 : vector<128x128xf32> to vector<128x128xbf16>
    %c384 = arith.constant 384 : index
    %c0_58 = arith.constant 0 : index
    %123 = vector.load %arg4[%c384, %c0_58] : memref<512x128xbf16, #tpu.memory_space<vmem>>, vector<128x128xbf16>
    %cst_59 = arith.constant dense<0.000000e+00> : vector<128x128xf32>
    %124 = tpu.matmul %122, %123, %cst_59 {dimension_numbers = #tpu.dot_dimension_numbers<[1], [0], [0], [1], [0, 0, 1, 1], [], []>} : vector<128x128xbf16>, vector<128x128xbf16>, vector<128x128xf32> -> vector<128x128xf32>
    %125 = arith.addf %121, %124 : vector<128x128xf32>
    %c0_60 = arith.constant 0 : index
    %c0_61 = arith.constant 0 : index
    %126 = vector.load %arg7[%c0_60, %c0_61] : memref<128x128xf32, #tpu.memory_space<vmem>>, vector<128x128xf32>
    tpu.vector_store %arg7[%c0_60, %c0_61], %125 {strides = array<i32>} : memref<128x128xf32, #tpu.memory_space<vmem>>, vector<128x128xf32>,
    %c0_62 = arith.constant 0 : index
    %c0_63 = arith.constant 0 : index
    %127 = vector.load %arg7[%c0_62, %c0_63] : memref<128x128xf32, #tpu.memory_space<vmem>>, vector<128x128xf32>
    %c0_64 = arith.constant 0 : index
    %c0_65 = arith.constant 0 : index
    %128 = vector.load %arg6[%c0_64, %c0_65] : memref<128x128xf32, #tpu.memory_space<vmem>>, vector<128x128xf32>
    tpu.vector_store %arg6[%c0_64, %c0_65], %127 {strides = array<i32>} : memref<128x128xf32, #tpu.memory_space<vmem>>, vector<128x128xf32>,
    return
  }
  func.func @transform_0(%arg0: i32) -> (i32, i32) {
    %c0_i32 = arith.constant 0 : i32
    %c0_i32_0 = arith.constant 0 : i32
    return %arg0, %c0_i32 : i32, i32
  }
  func.func @transform_1(%arg0: i32) -> (i32, i32) {
    %c0_i32 = arith.constant 0 : i32
    %c0_i32_0 = arith.constant 0 : i32
    %c0_i32_1 = arith.constant 0 : i32
    return %c0_i32, %c0_i32_0 : i32, i32
  }
  func.func @transform_2(%arg0: i32) -> (i32, i32) {
    %c0_i32 = arith.constant 0 : i32
    %c0_i32_0 = arith.constant 0 : i32
    %c0_i32_1 = arith.constant 0 : i32
    return %c0_i32, %c0_i32_0 : i32, i32
  }
  func.func @transform_3(%arg0: i32) -> (i32, i32) {
    %c0_i32 = arith.constant 0 : i32
    %c0_i32_0 = arith.constant 0 : i32
    %c0_i32_1 = arith.constant 0 : i32
    return %c0_i32, %c0_i32_0 : i32, i32
  }
  func.func @transform_4(%arg0: i32) -> (i32, i32) {
    %c0_i32 = arith.constant 0 : i32
    %c0_i32_0 = arith.constant 0 : i32
    %c0_i32_1 = arith.constant 0 : i32
    return %c0_i32, %c0_i32_0 : i32, i32
  }
  func.func @transform_5(%arg0: i32) -> (i32, i32) {
    %c0_i32 = arith.constant 0 : i32
    %c0_i32_0 = arith.constant 0 : i32
    return %arg0, %c0_i32 : i32, i32
  }
}

</mosaic_0001>

<bundles_post_ra>
// kernel: tpu_custom_call.1
= control target key start
LH: loop header
LB: loop body
LE: loop exit
PB: predicated region body
PF: predicated region fallthrough
CT: control target
= control target key end

     0   :  { %10 = vsyncpa [#allocation4], 0  ;;  %s5283_s0 = inlined_call_operand.hbm [shape: f32[256,128], index: 0, kind: input, shape index: {}]   ;;  %s5284_s1 = inlined_call_operand.hbm [shape: bf16[128,512], index: 1, kind: input, shape index: {}]   ;;  %s5285_s2 = inlined_call_operand.vmem [shape: f32[1,512], index: 2, kind: input, shape index: {}]   ;;  %s5286_s3 = inlined_call_operand.hbm [shape: bf16[512,128], index: 3, kind: input, shape index: {}]   ;;  %s5287_s4 = inlined_call_operand.vmem [shape: f32[1,128], index: 4, kind: input, shape index: {}]   ;;  %s5288_s5 = inlined_call_operand.hbm [shape: f32[256,128], index: 5, kind: output, shape index: {}]  }
   0x1   :  { %12 = vsyncpa [#allocation4 + $0x1], 0 }
   0x2   :  { %13 = vsyncpa [#allocation7], 0 }
   0x3   :  { %14 = vsyncpa [#allocation5], 0 }
   0x4   :  { %16 = vsyncpa [#allocation5 + $0x1], 0  ;;  %s3842_s18 = smov 0   ;;  %s3844_s19 = smov 0  }
   0x5   :  { %s3846_s20 = smov 0   ;;  %s3848_s21 = smov 0  }
   0x6 LB: > { %s3863_s22 = sadd.s32 4294967295, %s3797_s21   ;;  %s2808_s23 = sadd.s32 4294967294, %s3797_s21   ;;  %s3797_s21 = sphi %s3848_s21, %s5419_s21   ;;  %s3793_s20 = sphi %s3846_s20, %s5418_s20   ;;  %s3789_s19 = sphi %s3844_s19, %s5417_s19   ;;  %s3785_s18 = sphi %s3842_s18, %s5416_s18  }
   0x7   : > { %p42_p0 = scmp.ne.s32.totalorder %s3789_s19, %s3785_s18  ;;  %p5289_p1 = scmp.eq.s32.totalorder %s3863_s22, 0 }
   0x8   : > { %p156_p3 = scmp.eq.s32.totalorder %s2808_s23, 1  ;;  %p2809_p5 = scmp.ge.s32.totalorder %s3797_s21, 1 }
   0x9   : > { %p3872_p4 = por %p5289_p1, %p42_p0  ;;  %p163_p7 = scmp.lt.s32.totalorder %s3797_s21, 3 }
   0xa   : > { %p3877_p6 = por %p156_p3, %p42_p0  ;;  %s3799_s27 = smov [#allocation6]  }
   0xb   : > { %s5329_s24 = scalar_select %p3872_p4, 1, 0 }
   0xc   : > { %s5330_s25 = scalar_select %p3877_p6, 1, 0 }
   0xd   : > { %p3882_p8 = pnand %p2809_p5, %p163_p7  ;;  %s175_s28 = sshll.u32 %s3799_s27, 4  ;;  %s3886_s28 = int_to_ptr.vmem [resolvable:$true] %s175_s28 }
   0xe   : > { %s3800_s30 = smov [#allocation8]   ;;  %s3641_s9 = scalar_lea.hbm %s5284_s1, 4096 }
   0xf   : > { %p3225_p9 = pneg %p3882_p8  ;;  %s191_s6 = sshll.u32 %s3800_s30, 4  ;;  %s3897_s6 = int_to_ptr.vmem [resolvable:$true] %s191_s6 }
  0x10   : > { %p3642_p12 = scmp.ne.s32.totalorder %s5284_s1, %s3641_s9  ;;  %p3648_p5 = scmp.lt.u32.totalorder %s3641_s9, %s5284_s1 }
  0x11   : > { %p3893_p11 = pnand %p3225_p9, %p5289_p1 }
  0x13   : > { %p3643_p13 = pneg %p3893_p11 }
  0x15   : > { %p3644_p0 = pnand %p3643_p13, %p3642_p12 }
  0x17   : > { %p3645_p3 = pneg %p3644_p0 }
  0x19   : > { %p3650_p7 = pnand %p3648_p5, %p3645_p3 }
  0x1b   : > { %3653 = shalt.err (!%p3650_p7)
}
  0x1c   : > { %s3654_s14 = scalar_lea.vmem %s3886_s28, 4096  ;;  %p3662_p2 = scmp.lt.s32.totalorder %s3886_s28, %s3886_s28 }
  0x1d   : > { %p3655_p9 = scmp.ne.s32.totalorder %s3886_s28, %s3654_s14  ;;  %p3663_p12 = scmp.lt.s32.totalorder %s3654_s14, %s3654_s14 }
  0x1f   : > { %p3657_p10 = pnand %p3655_p9, %p3643_p13  ;;  %p3664_p0 = por %p3663_p12, %p3662_p2 }
  0x21   : > { %p3658_p1 = pneg %p3657_p10 }
  0x23   : > { %p3665_p6 = pnand %p3664_p0, %p3658_p1 }
  0x25   : > { %3668 = shalt.err (!%p3665_p6)
}
  0x26   : > { %s3801_s15 = smov 256   ;;  %s3802_s16 = smov 16  }
  0x27   : > { %3228 = dma.hbm_to_vmem [thread:$0]  (!%p3893_p11), %s5284_s1, 4096, %s3886_s28, [#allocation7], %s3801_s15, %s3801_s15, %s3802_s16  }
  0x28   : > { %s3669_s7 = scalar_lea.hbm %s5286_s3, 4096 }
  0x29   : > { %p3670_p2 = scmp.ne.s32.totalorder %s5286_s3, %s3669_s7  ;;  %p3676_p10 = scmp.lt.u32.totalorder %s3669_s7, %s5286_s3 }
  0x2b   : > { %p3672_p1 = pnand %p3670_p2, %p3643_p13 }
  0x2d   : > { %p3673_p6 = pneg %p3672_p1 }
  0x2f   : > { %p3678_p3 = pnand %p3676_p10, %p3673_p6 }
  0x31   : > { %3681 = shalt.err (!%p3678_p3)
}
  0x32   : > { %s3682_s28 = scalar_lea.vmem %s3897_s6, 4096  ;;  %p3690_p12 = scmp.lt.s32.totalorder %s3897_s6, %s3897_s6 }
  0x33   : > { %p3683_p5 = scmp.ne.s32.totalorder %s3897_s6, %s3682_s28  ;;  %p3691_p0 = scmp.lt.s32.totalorder %s3682_s28, %s3682_s28 }
  0x35   : > { %p3685_p7 = pnand %p3683_p5, %p3643_p13  ;;  %p3692_p2 = por %p3691_p0, %p3690_p12 }
  0x37   : > { %p3686_p9 = pneg %p3685_p7 }
  0x39   : > { %p3693_p1 = pnand %p3692_p2, %p3686_p9 }
  0x3b   : > { %3696 = shalt.err (!%p3693_p1)
}
  0x3c   : > { %s3803_s12 = smov 64   ;;  %s3804_s13 = smov 4  }
  0x3d   : > { %3231 = dma.hbm_to_vmem [thread:$0]  (!%p3893_p11), %s5286_s3, 4096, %s3897_s6, [#allocation7], %s3803_s12, %s3803_s12, %s3804_s13  }
  0x3e   : > { %s3952_s16 = sadd.s32 1, %s3797_s21   ;;  %s29_s23 = sadd.s32 1, %s3793_s20 }
  0x3f   : > { %s26_s17 = ssub.s32 %s3797_s21, %s3952_s16  ;;  %p36_p6 = scmp.ne.s32.totalorder %s3793_s20, %s3789_s19 }
  0x40   : > { %p27_p13 = scmp.eq.s32.totalorder %s26_s17, 0  ;;  %p37_p10 = scmp.eq.s32.totalorder %s3797_s21, 0 }
  0x41   : > { %p5333_p5 = scmp.eq.s32.totalorder %s3863_s22, 1  ;;  %p3242_p9 = scmp.lt.s32.totalorder %s3797_s21, 2 }
  0x42   : > { %s3961_s27 = scalar_select %p27_p13, %s3793_s20, %s29_s23  }
  0x43   : > { %p38_p3 = por %p37_p10, %p36_p6  ;;  %p3965_p7 = por %p5333_p5, %p36_p6 }
  0x44   : > { %s208_s29 = sand.u32 1, %s3793_s20   ;;  %s2955_s6 = sshll.u32 %s3797_s21, 11 }
  0x45   : > { %s5334_s30 = scalar_select %p3965_p7, 1, 0 }
  0x46   : > { %s2813_s7 = sshll.u32 %s208_s29, 7  ;;  %s3975_s10 = scalar_lea.hbm %s5283_s0, %s2955_s6 }
  0x47   : > { %s212_s11 = scalar_lea.vmem [#allocation3], %s2813_s7  ;;  %p3979_p11 = pnand %p3242_p9, %p38_p3 }
  0x48   : > { %s219_s28 = sshll.u32 %s212_s11, 4  ;;  %s3983_s13 = scalar_lea.sflag [#allocation4], %s208_s29  ;;  %s3977_s28 = int_to_ptr.vmem [resolvable:$true] %s219_s28 }
  0x49   : > { %s3697_s14 = scalar_lea.hbm %s3975_s10, 2048  ;;  %p3699_p0 = pneg %p3979_p11 }
  0x4a   : > { %p3698_p12 = scmp.ne.s32.totalorder %s3975_s10, %s3697_s14  ;;  %s3702_s23 = scalar_lea.hbm %s5283_s0, 4096 }
  0x4b   : > { %p3703_p13 = scmp.lt.u32.totalorder %s3975_s10, %s5283_s0  ;;  %p3704_p6 = scmp.lt.u32.totalorder %s3702_s23, %s3697_s14 }
  0x4c   : > { %p3700_p2 = pnand %p3699_p0, %p3698_p12  ;;  %p3706_p3 = scmp.lt.u32.totalorder %s3697_s14, %s3975_s10 }
  0x4d   : > { %p3705_p10 = por %p3704_p6, %p3703_p13 }
  0x4e   : > { %p3701_p1 = pneg %p3700_p2 }
  0x4f   : > { %p3707_p5 = por %p3706_p3, %p3705_p10 }
  0x51   : > { %p3708_p9 = pnand %p3707_p5, %p3701_p1 }
  0x53   : > { %3711 = shalt.err (!%p3708_p9)
}
  0x54   : > { %s3712_s29 = scalar_lea.vmem %s3977_s28, 2048  ;;  %s3805_s8 = smov [#allocation3]  }
  0x55   : > { %p3713_p12 = scmp.ne.s32.totalorder %s3977_s28, %s3712_s29  ;;  %s3717_s9 = sshll.u32 %s3805_s8, 4  ;;  %s3718_s9 = int_to_ptr.vmem [resolvable:$false] %s3717_s9 }
  0x56   : > { %s3719_s11 = scalar_lea.vmem %s3718_s9, 4096  ;;  %p3720_p4 = scmp.lt.s32.totalorder %s3977_s28, %s3718_s9 }
  0x57   : > { %p3715_p2 = pnand %p3713_p12, %p3699_p0  ;;  %p3721_p13 = scmp.lt.s32.totalorder %s3719_s11, %s3712_s29 }
  0x59   : > { %p3716_p7 = pneg %p3715_p2  ;;  %p3722_p6 = por %p3721_p13, %p3720_p4 }
  0x5b   : > { %p3723_p10 = pnand %p3722_p6, %p3716_p7 }
  0x5d   : > { %3726 = shalt.err (!%p3723_p10)
}
  0x5e   : > { %s3806_s14 = smov 128   ;;  %s3807_s15 = smov 8  }
  0x5f   : > { %3235 = dma.hbm_to_vmem [thread:$0]  (!%p3979_p11), %s3975_s10, 2048, %s3977_s28, %s3983_s13, %s3806_s14, %s3806_s14, %s3807_s15  }
  0x60   : > { %231 = sbr.rel (%p3882_p8) target bundleno = 1138 (0x472), region = 40 }
  0x67   : > { %s4014_s17 = sand.u32 1, %s3789_s19   ;;  %p5336_p4 = scmp.ne.s32.totalorder %s5329_s24, 0 }
  0x68   : > { %s2817_s23 = sshll.u32 %s4014_s17, 7  ;;  %s234_s7 = scalar_lea.sflag [#allocation4], %s4014_s17 }
  0x69   : > { %s4020_s6 = scalar_lea.vmem [#allocation3], %s2817_s23 }
  0x6a   : > { %3772 = dma.done.wait (%p5336_p4), %s234_s7, 2048  }
  0x6b   : > { %3774 = vsyncadd (%p5336_p4), %s234_s7, 4294965248  ;;  %p5337_p7 = scmp.eq.s32.totalorder %s3863_s22, 0 }
  0x6d   : > { %3776 = dma.done.wait (%p5337_p7), [#allocation7], 8192   ;;  %p5338_p8 = pmov %p5337_p7 }
  0x6e   : > { %v3808_v0 = vmov 0   ;;  %v3289_v1 = vld [vmem:[#allocation6 + $0x4] ss:$16 sps:$4 sm:$0xff]   ;;  %v3291_v2 = vld [vmem:[#allocation6] ss:$16 sps:$4 sm:$0xff]   ;;  %v276_v18 = vld [vmem:[%s4020_s6 + $0x8] sm:$0xff]  ;;  %v333_v57 = vlaneseq }
  0x6f   : > { %3778 = vsyncadd (%p5338_p8), [#allocation7], 4294959104  ;;  %545 = vmatprep.mubr.bf16.mxu1 %v3808_v0  ;;  %513 = vmatprep.subr.bf16.mxu1 %v3289_v1  ;;  %v3292_v3 = vld [vmem:[#allocation6 + $0x24] ss:$16 sps:$4 sm:$0xff]   ;;  %v3294_v4 = vld [vmem:[#allocation6 + $0x20] ss:$16 sps:$4 sm:$0xff]  }
  0x70   : > { %514 = vmatpush1.bf16.msra.mxu1 %v3291_v2  ;;  %v3295_v5 = vld [vmem:[#allocation6 + $0x44] ss:$16 sps:$4 sm:$0xff]   ;;  %v3297_v6 = vld [vmem:[#allocation6 + $0x40] ss:$16 sps:$4 sm:$0xff]   ;;  %v3315_v19 = vld [vmem:[#allocation6 + $0xc] ss:$16 sps:$4 sm:$0xff]  }
  0x71   : > { %515 = vmatprep.subr.bf16.mxu1 %v3292_v3  ;;  %v3298_v7 = vld [vmem:[#allocation6 + $0x64] ss:$16 sps:$4 sm:$0xff]   ;;  %v3300_v8 = vld [vmem:[#allocation6 + $0x60] ss:$16 sps:$4 sm:$0xff]   ;;  %v3313_v20 = vld [vmem:[#allocation6 + $0x8] ss:$16 sps:$4 sm:$0xff]  }
  0x72   : > { %v3301_v9 = vld [vmem:[#allocation6 + $0x84] ss:$16 sps:$4 sm:$0xff]   ;;  %v3303_v10 = vld [vmem:[#allocation6 + $0x80] ss:$16 sps:$4 sm:$0xff]   ;;  %v3318_v22 = vld [vmem:[#allocation6 + $0x2c] ss:$16 sps:$4 sm:$0xff]  }
  0x73   : > { %v3304_v11 = vld [vmem:[#allocation6 + $0xa4] ss:$16 sps:$4 sm:$0xff]   ;;  %v3306_v12 = vld [vmem:[#allocation6 + $0xa0] ss:$16 sps:$4 sm:$0xff]   ;;  %v278_v24 = vld [vmem:[%s4020_s6 + $0x18] sm:$0xff]  ;;  %v4066_v58 = vshrl.u32 %v333_v57, 7 }
  0x74   : > { %516 = vmatpush1.bf16.msra.mxu1 %v3294_v4  ;;  %v3307_v13 = vld [vmem:[#allocation6 + $0xc4] ss:$16 sps:$4 sm:$0xff]   ;;  %v3309_v14 = vld [vmem:[#allocation6 + $0xc0] ss:$16 sps:$4 sm:$0xff]   ;;  %v3316_v25 = vld [vmem:[#allocation6 + $0x28] ss:$16 sps:$4 sm:$0xff]  }
  0x75   : > { %517 = vmatprep.subr.bf16.mxu1 %v3295_v5  ;;  %v3310_v15 = vld [vmem:[#allocation6 + $0xe4] ss:$16 sps:$4 sm:$0xff]   ;;  %v3312_v16 = vld [vmem:[#allocation6 + $0xe0] ss:$16 sps:$4 sm:$0xff]   ;;  %v3321_v26 = vld [vmem:[#allocation6 + $0x4c] ss:$16 sps:$4 sm:$0xff]  }
  0x76   : > { %v275_v17 = vld [vmem:[%s4020_s6] sm:$0xff]  ;;  %v277_v23 = vld [vmem:[%s4020_s6 + $0x10] sm:$0xff]  ;;  %v3319_v27 = vld [vmem:[#allocation6 + $0x48] ss:$16 sps:$4 sm:$0xff]   ;;  %v335_v59 = vsub.s32 0, %v4066_v58  ;;  %v339_v62 = vsub.s32 1, %v4066_v58 }
  0x77   : > { %v4033_v21 = vpack.c.bf16 %v276_v18, %v275_v17  ;;  %v292_v28 = vpack.c.bf16 %v278_v24, %v277_v23  ;;  %v3324_v29 = vld [vmem:[#allocation6 + $0x6c] ss:$16 sps:$4 sm:$0xff]   ;;  %v279_v30 = vld [vmem:[%s4020_s6 + $0x20] sm:$0xff]  ;;  %v3322_v32 = vld [vmem:[#allocation6 + $0x68] ss:$16 sps:$4 sm:$0xff]   ;;  %s5190_s12 = scalar_lea.vmem [#allocation9], %s2817_s23 }
  0x78   : > { %518 = vmatpush1.bf16.msra.mxu1 %v3297_v6  ;;  %v280_v31 = vld [vmem:[%s4020_s6 + $0x28] sm:$0xff]  ;;  %v281_v37 = vld [vmem:[%s4020_s6 + $0x30] sm:$0xff]  ;;  %v282_v38 = vld [vmem:[%s4020_s6 + $0x38] sm:$0xff]  ;;  %s2956_s13 = sshll.u32 %s3863_s22, 11  ;;  %s2716_s29 = sshll.u32 %s5190_s12, 4  ;;  %s5236_s29 = int_to_ptr.vmem [resolvable:$true] %s2716_s29 }
  0x79   : > { %519 = vmatprep.subr.bf16.mxu1 %v3298_v7  ;;  %v3327_v33 = vld [vmem:[#allocation6 + $0x8c] ss:$16 sps:$4 sm:$0xff]   ;;  %v3325_v34 = vld [vmem:[#allocation6 + $0x88] ss:$16 sps:$4 sm:$0xff]   ;;  %v293_v35 = vpack.c.bf16 %v280_v31, %v279_v30  ;;  %v294_v41 = vpack.c.bf16 %v282_v38, %v281_v37  ;;  %v283_v44 = vld [vmem:[%s4020_s6 + $0x40] sm:$0xff]  ;;  %s5234_s11 = scalar_lea.hbm %s5288_s5, %s2956_s13  ;;  %s2703_s22 = scalar_lea.sflag [#allocation5], %s4014_s17 }
  0x7a   : > { %v3330_v36 = vld [vmem:[#allocation6 + $0xac] ss:$16 sps:$4 sm:$0xff]   ;;  %v3328_v39 = vld [vmem:[#allocation6 + $0xa8] ss:$16 sps:$4 sm:$0xff]   ;;  %v285_v48 = vld [vmem:[%s4020_s6 + $0x50] sm:$0xff]  ;;  %s3727_s14 = scalar_lea.vmem %s5236_s29, 2048 }
  0x7b   : > { %v3333_v40 = vld [vmem:[#allocation6 + $0xcc] ss:$16 sps:$4 sm:$0xff]   ;;  %v3331_v42 = vld [vmem:[#allocation6 + $0xc8] ss:$16 sps:$4 sm:$0xff]   ;;  %v287_v51 = vld [vmem:[%s4020_s6 + $0x60] sm:$0xff]  ;;  %p3728_p11 = scmp.ne.s32.totalorder %s5236_s29, %s3727_s14  ;;  %p5413_p0 = scmp.ne.s32.totalorder %s5334_s30, 0 }
  0x7c   : > { %520 = vmatpush1.bf16.msra.mxu1 %v3300_v8  ;;  %v3336_v43 = vld [vmem:[#allocation6 + $0xec] ss:$16 sps:$4 sm:$0xff]   ;;  %v3334_v46 = vld [vmem:[#allocation6 + $0xe8] ss:$16 sps:$4 sm:$0xff]   ;;  %v289_v54 = vld [vmem:[%s4020_s6 + $0x70] sm:$0xff]  ;;  %s3809_s15 = smov [#allocation9]  }
  0x7d   : > { %521 = vmatprep.subr.bf16.mxu1 %v3301_v9  ;;  %v284_v45 = vld [vmem:[%s4020_s6 + $0x48] sm:$0xff]  ;;  %v286_v49 = vld [vmem:[%s4020_s6 + $0x58] sm:$0xff]  ;;  %v4072_v60 = vld [vmem:[%s5285_s2] sm:$0xf]  ;;  %p3729_p1 = pnand %p3728_p11, %p5413_p0  ;;  %s3731_s23 = sshll.u32 %s3809_s15, 4  ;;  %s3732_s23 = int_to_ptr.vmem [resolvable:$false] %s3731_s23 }
  0x7e   : > { %v295_v47 = vpack.c.bf16 %v284_v45, %v283_v44  ;;  %v296_v50 = vpack.c.bf16 %v286_v49, %v285_v48  ;;  %v288_v52 = vld [vmem:[%s4020_s6 + $0x68] sm:$0xff]  ;;  %v290_v55 = vld [vmem:[%s4020_s6 + $0x78] sm:$0xff]  ;;  %v4075_v61 = vrot.slane %v4072_v60, %v335_v59  ;;  %s3733_s7 = scalar_lea.vmem %s3732_s23, 4096  ;;  %p3734_p5 = scmp.lt.s32.totalorder %s5236_s29, %s3732_s23 }
  0x7f   : > { %v297_v53 = vpack.c.bf16 %v288_v52, %v287_v51  ;;  %v298_v56 = vpack.c.bf16 %v290_v55, %v289_v54  ;;  %p3730_p3 = pneg %p3729_p1  ;;  %p3735_p9 = scmp.lt.s32.totalorder %s3733_s7, %s3727_s14 }
  0x80   : > { %522 = vmatpush1.bf16.msra.mxu1 %v3303_v10 }
  0x81   : > { %523 = vmatprep.subr.bf16.mxu1 %v3304_v11  ;;  %p3736_p12 = por %p3735_p9, %p3734_p5 }
  0x83   : > { %p3737_p2 = pnand %p3736_p12, %p3730_p3 }
  0x84   : > { %524 = vmatpush1.bf16.msra.mxu1 %v3306_v12 }
  0x85   : > { %525 = vmatprep.subr.bf16.mxu1 %v3307_v13 }
  0x88   : > { %526 = vmatpush1.bf16.msra.mxu1 %v3309_v14 }
  0x89   : > { %527 = vmatprep.subr.bf16.mxu1 %v3310_v15 }
  0x8c   : > { %528 = vmatpush1.bf16.msra.mxu1 %v3312_v16 }
  0x8d   : > { %626 = vmatprep.subr.bf16.mxu1 %v3315_v19 }
  0x8f   : > { %546 = vmatmul.mubr.bf16.vlgmr.msra.gmra.mrb[0].mxu1 %v4033_v21 }
  0x90   : > { %555 = vmatprep.mubr.bf16.mxu1 %v3808_v0  ;;  %627 = vmatpush1.bf16.msra.mxu1 %v3313_v20 }
  0x91   : > { %628 = vmatprep.subr.bf16.mxu1 %v3318_v22 }
  0x94   : > { %629 = vmatpush1.bf16.msra.mxu1 %v3316_v25 }
  0x95   : > { %630 = vmatprep.subr.bf16.mxu1 %v3321_v26 }
  0x97   : > { %556 = vmatmul.mubr.bf16.gmra.mrb[4].mxu1 %v292_v28 }
  0x98   : > { %565 = vmatprep.mubr.bf16.mxu1 %v3808_v0  ;;  %631 = vmatpush1.bf16.msra.mxu1 %v3319_v27 }
  0x99   : > { %632 = vmatprep.subr.bf16.mxu1 %v3324_v29 }
  0x9c   : > { %633 = vmatpush1.bf16.msra.mxu1 %v3322_v32 }
  0x9d   : > { %634 = vmatprep.subr.bf16.mxu1 %v3327_v33 }
  0x9f   : > { %566 = vmatmul.mubr.bf16.gmra.mrb[8].mxu1 %v293_v35 }
  0xa0   : > { %575 = vmatprep.mubr.bf16.mxu1 %v3808_v0  ;;  %635 = vmatpush1.bf16.msra.mxu1 %v3325_v34 }
  0xa1   : > { %636 = vmatprep.subr.bf16.mxu1 %v3330_v36 }
  0xa4   : > { %637 = vmatpush1.bf16.msra.mxu1 %v3328_v39 }
  0xa5   : > { %638 = vmatprep.subr.bf16.mxu1 %v3333_v40 }
  0xa7   : > { %576 = vmatmul.mubr.bf16.gmra.mrb[12].mxu1 %v294_v41 }
  0xa8   : > { %585 = vmatprep.mubr.bf16.mxu1 %v3808_v0  ;;  %639 = vmatpush1.bf16.msra.mxu1 %v3331_v42 }
  0xa9   : > { %640 = vmatprep.subr.bf16.mxu1 %v3336_v43 }
  0xac   : > { %641 = vmatpush1.bf16.msra.mxu1 %v3334_v46 }
  0xaf   : > { %586 = vmatmul.mubr.bf16.gmra.mrb[16].mxu1 %v295_v47 }
  0xb0   : > { %595 = vmatprep.mubr.bf16.mxu1 %v3808_v0 }
  0xb7   : > { %596 = vmatmul.mubr.bf16.gmra.mrb[20].mxu1 %v296_v50 }
  0xb8   : > { %605 = vmatprep.mubr.bf16.mxu1 %v3808_v0 }
  0xbf   : > { %606 = vmatmul.mubr.bf16.gmra.mrb[24].mxu1 %v297_v53 }
  0xc0   : > { %615 = vmatprep.mubr.bf16.mxu1 %v3808_v0 }
  0xc7   : > { %616 = vmatmul.mubr.bf16.gmra.mrb[28].mxu1 %v298_v56 }
  0xc8   : > { %658 = vmatprep.mubr.bf16.mxu1 %v3808_v0 }
  0xcf   : > { %659 = vmatmul.mubr.bf16.vlgmr.msra.gmra.mrb[32].mxu1 %v4033_v21 }
  0xd0   : > { %668 = vmatprep.mubr.bf16.mxu1 %v3808_v0 }
  0xd7   : > { %669 = vmatmul.mubr.bf16.gmra.mrb[36].mxu1 %v292_v28 }
  0xd8   : > { %678 = vmatprep.mubr.bf16.mxu1 %v3808_v0 }
  0xdf   : > { %679 = vmatmul.mubr.bf16.gmra.mrb[40].mxu1 %v293_v35 }
  0xe0   : > { %688 = vmatprep.mubr.bf16.mxu1 %v3808_v0 }
  0xe7   : > { %689 = vmatmul.mubr.bf16.gmra.mrb[44].mxu1 %v294_v41 }
  0xe8   : > { %698 = vmatprep.mubr.bf16.mxu1 %v3808_v0 }
  0xef   : > { %699 = vmatmul.mubr.bf16.gmra.mrb[48].mxu1 %v295_v47 }
  0xf0   : > { %708 = vmatprep.mubr.bf16.mxu1 %v3808_v0 }
  0xf7   : > { %709 = vmatmul.mubr.bf16.gmra.mrb[52].mxu1 %v296_v50 }
  0xf8   : > { %718 = vmatprep.mubr.bf16.mxu1 %v3808_v0 }
  0xff   : > { %719 = vmatmul.mubr.bf16.gmra.mrb[56].mxu1 %v297_v53 }
 0x100   : > { %728 = vmatprep.mubr.bf16.mxu1 %v3808_v0  ;;  %v4082_v0 = vrot.slane %v4072_v60, %v339_v62  ;;  %v343_v62 = vsub.s32 2, %v4066_v58 }
 0x107   : > { %729 = vmatmul.mubr.bf16.gmra.mrb[60].mxu1 %v298_v56 }
 0x162   : > { %v547_v63 = vpop.f32.mrb[0].mxu1 }
 0x163   : > { %v4079_v1 = vadd.f32 %v547_v63, %v4075_v61  ;;  %v549_v2 = vpop.f32.mrb[1].mxu1 }
 0x164   : > { %v551_v3 = vpop.f32.mrb[2].mxu1  ;;  %v4089_v6 = vadd.f32 %v549_v2, %v4082_v0 }
 0x165   : > { %v553_v4 = vpop.f32.mrb[3].mxu1  ;;  %778 = vadd.xlane.f32.xlu0 %v4079_v1  ;;  %v4094_v8 = vadd.f32 %v551_v3, %v4075_v61  ;;  %v347_v3 = vsub.s32 3, %v4066_v58 }
 0x166   : > { %v4086_v5 = vadd.f32 %v553_v4, %v4082_v0 }
 0x168   : > { %1253 = vadd.xlane.f32.xlu1 %v4086_v5 }
 0x169   : > { %1251 = vadd.xlane.f32.xlu0 %v4089_v6 }
 0x16a   : > { %v557_v7 = vpop.f32.mrb[4].mxu1 }
 0x16b   : > { %v4097_v9 = vadd.f32 %v557_v7, %v4075_v61  ;;  %v559_v10 = vpop.f32.mrb[5].mxu1 }
 0x16c   : > { %v561_v11 = vpop.f32.mrb[6].mxu1  ;;  %v4102_v13 = vadd.f32 %v559_v10, %v4082_v0  ;;  %v4206_v10 = vrot.slane %v4072_v60, %v343_v62 }
 0x16d   : > { %v563_v12 = vpop.f32.mrb[7].mxu1  ;;  %782 = vadd.xlane.f32.xlu1 %v4097_v9  ;;  %780 = vadd.xlane.f32.xlu0 %v4094_v8  ;;  %v4105_v14 = vadd.f32 %v561_v11, %v4075_v61  ;;  %v4211_v11 = vrot.slane %v4072_v60, %v347_v3 }
 0x16e   : > { %v4110_v16 = vadd.f32 %v563_v12, %v4082_v0 }
 0x171   : > { %784 = vadd.xlane.f32.xlu1 %v4105_v14  ;;  %1255 = vadd.xlane.f32.xlu0 %v4102_v13 }
 0x172   : > { %v567_v15 = vpop.f32.mrb[8].mxu1 }
 0x173   : > { %v4113_v17 = vadd.f32 %v567_v15, %v4075_v61  ;;  %v569_v18 = vpop.f32.mrb[9].mxu1 }
 0x174   : > { %v571_v19 = vpop.f32.mrb[10].mxu1  ;;  %v4118_v21 = vadd.f32 %v569_v18, %v4082_v0 }
 0x175   : > { %v573_v20 = vpop.f32.mrb[11].mxu1  ;;  %1257 = vadd.xlane.f32.xlu1 %v4110_v16  ;;  %786 = vadd.xlane.f32.xlu0 %v4113_v17  ;;  %v4121_v22 = vadd.f32 %v571_v19, %v4075_v61 }
 0x176   : > { %v4126_v24 = vadd.f32 %v573_v20, %v4082_v0 }
 0x179   : > { %788 = vadd.xlane.f32.xlu1 %v4121_v22  ;;  %1259 = vadd.xlane.f32.xlu0 %v4118_v21 }
 0x17a   : > { %v577_v23 = vpop.f32.mrb[12].mxu1 }
 0x17b   : > { %v4129_v25 = vadd.f32 %v577_v23, %v4075_v61  ;;  %v579_v26 = vpop.f32.mrb[13].mxu1 }
 0x17c   : > { %v581_v27 = vpop.f32.mrb[14].mxu1  ;;  %v4134_v29 = vadd.f32 %v579_v26, %v4082_v0 }
 0x17d   : > { %v583_v28 = vpop.f32.mrb[15].mxu1  ;;  %1261 = vadd.xlane.f32.xlu1 %v4126_v24  ;;  %790 = vadd.xlane.f32.xlu0 %v4129_v25  ;;  %v4137_v30 = vadd.f32 %v581_v27, %v4075_v61 }
 0x17e   : > { %v4142_v32 = vadd.f32 %v583_v28, %v4082_v0 }
 0x181   : > { %792 = vadd.xlane.f32.xlu1 %v4137_v30  ;;  %1263 = vadd.xlane.f32.xlu0 %v4134_v29 }
 0x182   : > { %v587_v31 = vpop.f32.mrb[16].mxu1 }
 0x183   : > { %v4145_v33 = vadd.f32 %v587_v31, %v4075_v61  ;;  %v589_v34 = vpop.f32.mrb[17].mxu1 }
 0x184   : > { %v591_v35 = vpop.f32.mrb[18].mxu1  ;;  %v4150_v37 = vadd.f32 %v589_v34, %v4082_v0 }
 0x185   : > { %v593_v36 = vpop.f32.mrb[19].mxu1  ;;  %1265 = vadd.xlane.f32.xlu1 %v4142_v32  ;;  %794 = vadd.xlane.f32.xlu0 %v4145_v33  ;;  %v4153_v38 = vadd.f32 %v591_v35, %v4075_v61 }
 0x186   : > { %v4158_v40 = vadd.f32 %v593_v36, %v4082_v0 }
 0x189   : > { %796 = vadd.xlane.f32.xlu1 %v4153_v38  ;;  %1267 = vadd.xlane.f32.xlu0 %v4150_v37 }
 0x18a   : > { %v597_v39 = vpop.f32.mrb[20].mxu1 }
 0x18b   : > { %v4161_v41 = vadd.f32 %v597_v39, %v4075_v61  ;;  %v599_v42 = vpop.f32.mrb[21].mxu1 }
 0x18c   : > { %v601_v43 = vpop.f32.mrb[22].mxu1  ;;  %v4166_v45 = vadd.f32 %v599_v42, %v4082_v0 }
 0x18d   : > { %v603_v44 = vpop.f32.mrb[23].mxu1  ;;  %1269 = vadd.xlane.f32.xlu1 %v4158_v40  ;;  %798 = vadd.xlane.f32.xlu0 %v4161_v41  ;;  %v4169_v46 = vadd.f32 %v601_v43, %v4075_v61 }
 0x18e   : > { %v4174_v48 = vadd.f32 %v603_v44, %v4082_v0 }
 0x191   : > { %800 = vadd.xlane.f32.xlu1 %v4169_v46  ;;  %1271 = vadd.xlane.f32.xlu0 %v4166_v45 }
 0x192   : > { %v607_v47 = vpop.f32.mrb[24].mxu1 }
 0x193   : > { %v4177_v49 = vadd.f32 %v607_v47, %v4075_v61  ;;  %v609_v50 = vpop.f32.mrb[25].mxu1 }
 0x194   : > { %v611_v51 = vpop.f32.mrb[26].mxu1  ;;  %v4182_v53 = vadd.f32 %v609_v50, %v4082_v0 }
 0x195   : > { %v613_v52 = vpop.f32.mrb[27].mxu1  ;;  %1273 = vadd.xlane.f32.xlu1 %v4174_v48  ;;  %802 = vadd.xlane.f32.xlu0 %v4177_v49  ;;  %v4185_v54 = vadd.f32 %v611_v51, %v4075_v61 }
 0x196   : > { %v4190_v56 = vadd.f32 %v613_v52, %v4082_v0 }
 0x199   : > { %804 = vadd.xlane.f32.xlu1 %v4185_v54  ;;  %1275 = vadd.xlane.f32.xlu0 %v4182_v53 }
 0x19a   : > { %v617_v55 = vpop.f32.mrb[28].mxu1 }
 0x19b   : > { %v4193_v57 = vadd.f32 %v617_v55, %v4075_v61  ;;  %v619_v59 = vpop.f32.mrb[29].mxu1 }
 0x19c   : > { %v621_v63 = vpop.f32.mrb[30].mxu1  ;;  %v4200_v4 = vadd.f32 %v619_v59, %v4082_v0 }
 0x19d   : > { %v623_v2 = vpop.f32.mrb[31].mxu1  ;;  %1277 = vadd.xlane.f32.xlu1 %v4190_v56  ;;  %806 = vadd.xlane.f32.xlu0 %v4193_v57  ;;  %v4203_v7 = vadd.f32 %v621_v63, %v4075_v61 }
 0x19e   : > { %v4214_v15 = vadd.f32 %v623_v2, %v4082_v0 }
 0x1a1   : > { %808 = vadd.xlane.f32.xlu1 %v4203_v7  ;;  %1279 = vadd.xlane.f32.xlu0 %v4200_v4 }
 0x1a2   : > { %v660_v12 = vpop.f32.mrb[32].mxu1 }
 0x1a3   : > { %v4217_v58 = vadd.f32 %v660_v12, %v4206_v10  ;;  %v662_v18 = vpop.f32.mrb[33].mxu1 }
 0x1a4   : > { %v664_v61 = vpop.f32.mrb[34].mxu1  ;;  %v4220_v19 = vadd.f32 %v662_v18, %v4211_v11 }
 0x1a5   : > { %1281 = vadd.xlane.f32.xlu1 %v4214_v15  ;;  %1724 = vadd.xlane.f32.xlu0 %v4217_v58  ;;  %v4225_v20 = vadd.f32 %v664_v61, %v4206_v10  ;;  %v666_v60 = vpop.f32.mrb[35].mxu1 }
 0x1a6   : > { %5339 = vst [vmem:[#allocation13_spill] sm:$0xff] %v4220_v19  ;;  %v4228_v23 = vadd.f32 %v666_v60, %v4211_v11 }
 0x1a8   : > { %5340 = vst [vmem:[#allocation14_spill] sm:$0xff] %v4228_v23 }
 0x1a9   : > { %1726 = vadd.xlane.f32.xlu1 %v4225_v20  ;;  %2197 = vadd.xlane.f32.xlu0 %v4220_v19 }
 0x1aa   : > { %v670_v0 = vpop.f32.mrb[36].mxu1 }
 0x1ab   : > { %v4233_v26 = vadd.f32 %v670_v0, %v4206_v10  ;;  %v672_v27 = vpop.f32.mrb[37].mxu1 }
 0x1ac   : > { %v674_v28 = vpop.f32.mrb[38].mxu1  ;;  %v4236_v31 = vadd.f32 %v672_v27, %v4211_v11 }
 0x1ad   : > { %2199 = vadd.xlane.f32.xlu1 %v4228_v23  ;;  %1728 = vadd.xlane.f32.xlu0 %v4233_v26  ;;  %v4241_v34 = vadd.f32 %v674_v28, %v4206_v10  ;;  %v676_v35 = vpop.f32.mrb[39].mxu1 }
 0x1ae   : > { %5341 = vst [vmem:[#allocation15_spill] sm:$0xff] %v4236_v31  ;;  %v4244_v36 = vadd.f32 %v676_v35, %v4211_v11 }
 0x1b0   : > { %5342 = vst [vmem:[#allocation16_spill] sm:$0xff] %v4244_v36 }
 0x1b1   : > { %1730 = vadd.xlane.f32.xlu1 %v4241_v34  ;;  %2201 = vadd.xlane.f32.xlu0 %v4236_v31 }
 0x1b2   : > { %v680_v39 = vpop.f32.mrb[40].mxu1 }
 0x1b3   : > { %v4249_v42 = vadd.f32 %v680_v39, %v4206_v10  ;;  %v682_v43 = vpop.f32.mrb[41].mxu1 }
 0x1b4   : > { %v684_v44 = vpop.f32.mrb[42].mxu1  ;;  %v4252_v47 = vadd.f32 %v682_v43, %v4211_v11 }
 0x1b5   : > { %2203 = vadd.xlane.f32.xlu1 %v4244_v36  ;;  %1732 = vadd.xlane.f32.xlu0 %v4249_v42  ;;  %v4257_v50 = vadd.f32 %v684_v44, %v4206_v10  ;;  %v686_v51 = vpop.f32.mrb[43].mxu1 }
 0x1b6   : > { %5343 = vst [vmem:[#allocation17_spill] sm:$0xff] %v4252_v47  ;;  %v4260_v52 = vadd.f32 %v686_v51, %v4211_v11 }
 0x1b8   : > { %5344 = vst [vmem:[#allocation18_spill] sm:$0xff] %v4260_v52 }
 0x1b9   : > { %1734 = vadd.xlane.f32.xlu1 %v4257_v50  ;;  %2205 = vadd.xlane.f32.xlu0 %v4252_v47 }
 0x1ba   : > { %v690_v55 = vpop.f32.mrb[44].mxu1 }
 0x1bb   : > { %v4265_v59 = vadd.f32 %v690_v55, %v4206_v10  ;;  %v692_v62 = vpop.f32.mrb[45].mxu1 }
 0x1bc   : > { %v694_v63 = vpop.f32.mrb[46].mxu1  ;;  %v4268_v2 = vadd.f32 %v692_v62, %v4211_v11 }
 0x1bd   : > { %2207 = vadd.xlane.f32.xlu1 %v4260_v52  ;;  %1736 = vadd.xlane.f32.xlu0 %v4265_v59  ;;  %v4273_v3 = vadd.f32 %v694_v63, %v4206_v10  ;;  %v696_v12 = vpop.f32.mrb[47].mxu1 }
 0x1be   : > { %5345 = vst [vmem:[#allocation19_spill] sm:$0xff] %v4268_v2  ;;  %v4276_v18 = vadd.f32 %v696_v12, %v4211_v11 }
 0x1c0   : > { %5346 = vst [vmem:[#allocation20_spill] sm:$0xff] %v4276_v18 }
 0x1c1   : > { %1738 = vadd.xlane.f32.xlu1 %v4273_v3  ;;  %2209 = vadd.xlane.f32.xlu0 %v4268_v2 }
 0x1c2   : > { %v700_v61 = vpop.f32.mrb[48].mxu1 }
 0x1c3   : > { %v4281_v60 = vadd.f32 %v700_v61, %v4206_v10  ;;  %v702_v0 = vpop.f32.mrb[49].mxu1 }
 0x1c4   : > { %v704_v27 = vpop.f32.mrb[50].mxu1  ;;  %v4284_v28 = vadd.f32 %v702_v0, %v4211_v11 }
 0x1c5   : > { %2211 = vadd.xlane.f32.xlu1 %v4276_v18  ;;  %1740 = vadd.xlane.f32.xlu0 %v4281_v60  ;;  %v4289_v35 = vadd.f32 %v704_v27, %v4206_v10  ;;  %v706_v39 = vpop.f32.mrb[51].mxu1 }
 0x1c6   : > { %5347 = vst [vmem:[#allocation21_spill] sm:$0xff] %v4284_v28  ;;  %v4292_v43 = vadd.f32 %v706_v39, %v4211_v11 }
 0x1c8   : > { %5348 = vst [vmem:[#allocation22_spill] sm:$0xff] %v4292_v43 }
 0x1c9   : > { %1742 = vadd.xlane.f32.xlu1 %v4289_v35  ;;  %2213 = vadd.xlane.f32.xlu0 %v4284_v28 }
 0x1ca   : > { %v710_v44 = vpop.f32.mrb[52].mxu1 }
 0x1cb   : > { %v4297_v51 = vadd.f32 %v710_v44, %v4206_v10  ;;  %v712_v55 = vpop.f32.mrb[53].mxu1 }
 0x1cc   : > { %v714_v62 = vpop.f32.mrb[54].mxu1  ;;  %v4300_v63 = vadd.f32 %v712_v55, %v4211_v11 }
 0x1cd   : > { %2215 = vadd.xlane.f32.xlu1 %v4292_v43  ;;  %1744 = vadd.xlane.f32.xlu0 %v4297_v51  ;;  %v4305_v12 = vadd.f32 %v714_v62, %v4206_v10  ;;  %v716_v61 = vpop.f32.mrb[55].mxu1 }
 0x1ce   : > { %5349 = vst [vmem:[#allocation23_spill] sm:$0xff] %v4300_v63  ;;  %v4308_v0 = vadd.f32 %v716_v61, %v4211_v11 }
 0x1d0   : > { %5350 = vst [vmem:[#allocation24_spill] sm:$0xff] %v4308_v0 }
 0x1d1   : > { %1746 = vadd.xlane.f32.xlu1 %v4305_v12  ;;  %2217 = vadd.xlane.f32.xlu0 %v4300_v63 }
 0x1d2   : > { %v720_v27 = vpop.f32.mrb[56].mxu1 }
 0x1d3   : > { %v4313_v39 = vadd.f32 %v720_v27, %v4206_v10  ;;  %v722_v44 = vpop.f32.mrb[57].mxu1 }
 0x1d4   : > { %v4316_v55 = vadd.f32 %v722_v44, %v4211_v11  ;;  %v724_v43 = vpop.f32.mrb[58].mxu1 }
 0x1d5   : > { %2219 = vadd.xlane.f32.xlu1 %v4308_v0  ;;  %1748 = vadd.xlane.f32.xlu0 %v4313_v39  ;;  %v4321_v62 = vadd.f32 %v724_v43, %v4206_v10  ;;  %v726_v61 = vpop.f32.mrb[59].mxu1 }
 0x1d6   : > { %v4324_v28 = vadd.f32 %v726_v61, %v4211_v11 }
 0x1d9   : > { %1750 = vadd.xlane.f32.xlu1 %v4321_v62 }
 0x1da   : > { %v730_v27 = vpop.f32.mrb[60].mxu1 }
 0x1db   : > { %v4328_v63 = vadd.f32 %v730_v27, %v4206_v10  ;;  %v732_v44 = vpop.f32.mrb[61].mxu1 }
 0x1dc   : > { %v4331_v18 = vadd.f32 %v732_v44, %v4211_v11  ;;  %v734_v0 = vpop.f32.mrb[62].mxu1 }
 0x1dd   : > { %v4334_v2 = vadd.f32 %v734_v0, %v4206_v10  ;;  %1752 = vadd.xlane.f32.xlu0 %v4328_v63  ;;  %v736_v43 = vpop.f32.mrb[63].mxu1 }
 0x1de   : > { %v4338_v61 = vadd.f32 %v736_v43, %v4211_v11 }
 0x1df   : > { %5351 = vst [vmem:[#allocation25_spill] sm:$0xff] %v4334_v2  ;;  %1754 = vadd.xlane.f32.xlu1 %v4334_v2 }
 0x1f2   : > { %v779_v52 = vpop.xlane.xlu0 %778 }
 0x1f3   : > { %v810_v47 = vmul.f32 0.0078125, %v779_v52 }
 0x1f5   : > { %v1254_v27 = vpop.xlane.xlu1 %1253  ;;  %v4342_v36 = vsub.f32 %v4079_v1, %v810_v47 }
 0x1f6   : > { %v1252_v44 = vpop.xlane.xlu0 %1251  ;;  %v1284_v23 = vmul.f32 0.0078125, %v1254_v27 }
 0x1f7   : > { %v1283_v31 = vmul.f32 0.0078125, %v1252_v44  ;;  %v842_v10 = vmul.f32 %v4342_v36, %v4342_v36 }
 0x1f9   : > { %858 = vadd.xlane.f32.xlu0 %v842_v10  ;;  %v4347_v0 = vsub.f32 %v4089_v6, %v1283_v31  ;;  %v4358_v6 = vsub.f32 %v4086_v5, %v1284_v23 }
 0x1fa   : > { %v783_v11 = vpop.xlane.xlu1 %782  ;;  %v781_v43 = vpop.xlane.xlu0 %780 }
 0x1fb   : > { %5352 = vst [vmem:[#allocation26_spill] sm:$0xff] %v4347_v0  ;;  %v812_v19 = vmul.f32 0.0078125, %v783_v11  ;;  %v811_v2 = vmul.f32 0.0078125, %v781_v43  ;;  %v1315_v52 = vmul.f32 %v4347_v0, %v4347_v0  ;;  %5353 = vst [vmem:[#allocation27_spill] sm:$0xff] %v4358_v6  ;;  %v3339_v0 = vld [vmem:[#allocation8 + $0x10] sm:$0xff]  }
 0x1fd   : > { %1331 = vadd.xlane.f32.xlu0 %v1315_v52  ;;  %v4352_v1 = vsub.f32 %v4097_v9, %v812_v19  ;;  %v4355_v47 = vsub.f32 %v4094_v8, %v811_v2  ;;  %v1316_v2 = vmul.f32 %v4358_v6, %v4358_v6 }
 0x1fe   : > { %v785_v44 = vpop.xlane.xlu1 %784  ;;  %v1256_v10 = vpop.xlane.xlu0 %1255 }
 0x1ff   : > { %v813_v31 = vmul.f32 0.0078125, %v785_v44  ;;  %v1285_v27 = vmul.f32 0.0078125, %v1256_v10  ;;  %v844_v11 = vmul.f32 %v4352_v1, %v4352_v1  ;;  %v843_v43 = vmul.f32 %v4355_v47, %v4355_v47 }
 0x201   : > { %862 = vadd.xlane.f32.xlu0 %v844_v11  ;;  %860 = vadd.xlane.f32.xlu1 %v843_v43  ;;  %v4365_v9 = vsub.f32 %v4102_v13, %v1285_v27  ;;  %v4372_v44 = vsub.f32 %v4105_v14, %v813_v31 }
 0x202   : > { %v1258_v8 = vpop.xlane.xlu1 %1257  ;;  %v787_v19 = vpop.xlane.xlu0 %786 }
 0x203   : > { %5354 = vst [vmem:[#allocation28_spill] sm:$0xff] %v4365_v9  ;;  %v1286_v5 = vmul.f32 0.0078125, %v1258_v8  ;;  %v814_v23 = vmul.f32 0.0078125, %v787_v19  ;;  %v1317_v52 = vmul.f32 %v4365_v9, %v4365_v9  ;;  %v845_v43 = vmul.f32 %v4372_v44, %v4372_v44 }
 0x205   : > { %1333 = vadd.xlane.f32.xlu1 %v1316_v2  ;;  %1335 = vadd.xlane.f32.xlu0 %v1317_v52  ;;  %v4375_v10 = vsub.f32 %v4113_v17, %v814_v23  ;;  %v4384_v19 = vsub.f32 %v4110_v16, %v1286_v5 }
 0x206   : > { %v789_v13 = vpop.xlane.xlu1 %788  ;;  %v4377_v27 = vpop.xlane.xlu0 %1259 }
 0x207   : > { %v815_v11 = vmul.f32 0.0078125, %v789_v13  ;;  %v846_v8 = vmul.f32 %v4375_v10, %v4375_v10  ;;  %5355 = vst [vmem:[#allocation29_spill] sm:$0xff] %v4384_v19  ;;  %v1318_v2 = vmul.f32 %v4384_v19, %v4384_v19 }
 0x209   : > { %864 = vadd.xlane.f32.xlu1 %v845_v43  ;;  %866 = vadd.xlane.f32.xlu0 %v846_v8  ;;  %v4391_v23 = vsub.f32 %v4121_v22, %v815_v11 }
 0x20a   : > { %v4386_v14 = vpop.xlane.xlu1 %1261  ;;  %v791_v31 = vpop.xlane.xlu0 %790 }
 0x20b   : > { %v816_v17 = vmul.f32 0.0078125, %v791_v31  ;;  %v847_v5 = vmul.f32 %v4391_v23, %v4391_v23 }
 0x20d   : > { %1337 = vadd.xlane.f32.xlu1 %v1318_v2  ;;  %v4394_v52 = vsub.f32 %v4129_v25, %v816_v17 }
 0x20e   : > { %v793_v13 = vpop.xlane.xlu1 %792  ;;  %v4396_v9 = vpop.xlane.xlu0 %1263 }
 0x20f   : > { %v817_v16 = vmul.f32 0.0078125, %v793_v13  ;;  %v848_v43 = vmul.f32 %v4394_v52, %v4394_v52 }
 0x211   : > { %868 = vadd.xlane.f32.xlu1 %v847_v5  ;;  %870 = vadd.xlane.f32.xlu0 %v848_v43  ;;  %v4403_v8 = vsub.f32 %v4137_v30, %v817_v16  ;;  %v3337_v16 = vld [vmem:[#allocation8] sm:$0xff]  }
 0x212   : > { %v4405_v22 = vpop.xlane.xlu1 %1265  ;;  %v795_v11 = vpop.xlane.xlu0 %794  ;;  %3021 = vmatprep.subr.bf16.mxu0 %v3337_v16 }
 0x213   : > { %v818_v25 = vmul.f32 0.0078125, %v795_v11  ;;  %v849_v31 = vmul.f32 %v4403_v8, %v4403_v8  ;;  %3022 = vmatpush3.bf16.msra.mxu0 %v3337_v16 }
 0x215   : > { %872 = vadd.xlane.f32.xlu1 %v849_v31  ;;  %v4410_v17 = vsub.f32 %v4145_v33, %v818_v25  ;;  %v3338_v31 = vld [vmem:[#allocation8 + $0x8] sm:$0xff]  }
 0x216   : > { %v797_v2 = vpop.xlane.xlu1 %796  ;;  %v4412_v13 = vpop.xlane.xlu0 %1267  ;;  %3023 = vmatprep.subr.bf16.mxu0 %v3338_v31 }
 0x217   : > { %v819_v19 = vmul.f32 0.0078125, %v797_v2  ;;  %v850_v5 = vmul.f32 %v4410_v17, %v4410_v17  ;;  %3024 = vmatpush3.bf16.msra.mxu0 %v3338_v31 }
 0x218   : > { %3025 = vmatprep.subr.bf16.mxu0 %v3339_v0 }
 0x219   : > { %874 = vadd.xlane.f32.xlu0 %v850_v5  ;;  %v4417_v30 = vsub.f32 %v4153_v38, %v819_v19 }
 0x21a   : > { %v4419_v43 = vpop.xlane.xlu1 %1269  ;;  %v799_v11 = vpop.xlane.xlu0 %798 }
 0x21b   : > { %5356 = vst [vmem:[#allocation30_spill] sm:$0xff] %v4417_v30  ;;  %v820_v6 = vmul.f32 0.0078125, %v799_v11  ;;  %v851_v33 = vmul.f32 %v4417_v30, %v4417_v30  ;;  %3026 = vmatpush3.bf16.msra.mxu0 %v3339_v0  ;;  %v1287_v0 = vmul.f32 0.0078125, %v4377_v27  ;;  %v1288_v27 = vmul.f32 0.0078125, %v4386_v14 }
 0x21c   : > { %v1290_v14 = vmul.f32 0.0078125, %v4405_v22 }
 0x21d   : > { %876 = vadd.xlane.f32.xlu1 %v851_v33  ;;  %v4424_v25 = vsub.f32 %v4161_v41, %v820_v6 }
 0x21e   : > { %v801_v2 = vpop.xlane.xlu1 %800  ;;  %v4426_v5 = vpop.xlane.xlu0 %1271 }
 0x21f   : > { %5357 = vst [vmem:[#allocation31_spill] sm:$0xff] %v4424_v25  ;;  %v821_v38 = vmul.f32 0.0078125, %v801_v2  ;;  %v852_v19 = vmul.f32 %v4424_v25, %v4424_v25  ;;  %v3340_v25 = vld [vmem:[#allocation8 + $0x18] sm:$0xff]  }
 0x220   : > { %3027 = vmatprep.subr.bf16.mxu0 %v3340_v25 }
 0x221   : > { %878 = vadd.xlane.f32.xlu0 %v852_v19  ;;  %v4431_v11 = vsub.f32 %v4169_v46, %v821_v38  ;;  %3028 = vmatpush3.bf16.msra.mxu0 %v3340_v25  ;;  %v3342_v25 = vld [vmem:[#allocation8 + $0x28] sm:$0xff]  }
 0x222   : > { %v4433_v16 = vpop.xlane.xlu1 %1273  ;;  %v803_v33 = vpop.xlane.xlu0 %802 }
 0x223   : > { %5358 = vst [vmem:[#allocation32_spill] sm:$0xff] %v4431_v11  ;;  %v822_v41 = vmul.f32 0.0078125, %v803_v33  ;;  %v853_v6 = vmul.f32 %v4431_v11, %v4431_v11  ;;  %v3341_v11 = vld [vmem:[#allocation8 + $0x20] sm:$0xff]  }
 0x224   : > { %3029 = vmatprep.subr.bf16.mxu0 %v3341_v11 }
 0x225   : > { %880 = vadd.xlane.f32.xlu1 %v853_v6  ;;  %v4438_v2 = vsub.f32 %v4177_v49, %v822_v41  ;;  %3030 = vmatpush3.bf16.msra.mxu0 %v3341_v11 }
 0x226   : > { %v805_v31 = vpop.xlane.xlu1 %804  ;;  %v4440_v19 = vpop.xlane.xlu0 %1275  ;;  %3031 = vmatprep.subr.bf16.mxu0 %v3342_v25 }
 0x227   : > { %5359 = vst [vmem:[#allocation33_spill] sm:$0xff] %v4438_v2  ;;  %v823_v46 = vmul.f32 0.0078125, %v805_v31  ;;  %v854_v38 = vmul.f32 %v4438_v2, %v4438_v2  ;;  %v1289_v2 = vmul.f32 0.0078125, %v4396_v9 }
 0x229   : > { %882 = vadd.xlane.f32.xlu0 %v854_v38  ;;  %v4445_v33 = vsub.f32 %v4185_v54, %v823_v46  ;;  %v4456_v46 = vsub.f32 %v4118_v21, %v1287_v0  ;;  %3032 = vmatpush3.bf16.msra.mxu0 %v3342_v25  ;;  %v4471_v0 = vsub.f32 %v4126_v24, %v1288_v27  ;;  %v1291_v27 = vmul.f32 0.0078125, %v4412_v13 }
 0x22a   : > { %v4448_v6 = vpop.xlane.xlu1 %1277  ;;  %v807_v49 = vpop.xlane.xlu0 %806  ;;  %v4474_v25 = vsub.f32 %v4134_v29, %v1289_v2  ;;  %v4483_v24 = vsub.f32 %v4142_v32, %v1290_v14  ;;  %v1292_v32 = vmul.f32 0.0078125, %v4419_v43  ;;  %v1293_v14 = vmul.f32 0.0078125, %v4426_v5 }
 0x22b   : > { %5360 = vst [vmem:[#allocation34_spill] sm:$0xff] %v4445_v33  ;;  %v824_v41 = vmul.f32 0.0078125, %v807_v49  ;;  %v855_v30 = vmul.f32 %v4445_v33, %v4445_v33  ;;  %v1319_v21 = vmul.f32 %v4456_v46, %v4456_v46  ;;  %v1320_v22 = vmul.f32 %v4471_v0, %v4471_v0 }
 0x22c   : > { %5361 = vst [vmem:[#allocation35_spill] sm:$0xff] %v4474_v25  ;;  %5362 = vst [vmem:[#allocation36_spill] sm:$0xff] %v4483_v24  ;;  %v1294_v13 = vmul.f32 0.0078125, %v4433_v16  ;;  %v4507_v43 = vsub.f32 %v4158_v40, %v1292_v32  ;;  %v1296_v5 = vmul.f32 0.0078125, %v4448_v6 }
 0x22d   : > { %884 = vadd.xlane.f32.xlu1 %v855_v30  ;;  %v4453_v31 = vsub.f32 %v4193_v57, %v824_v41  ;;  %v3343_v30 = vld [vmem:[#allocation8 + $0x30] sm:$0xff]  }
 0x22e   : > { %v809_v38 = vpop.xlane.xlu1 %808  ;;  %v1280_v54 = vpop.xlane.xlu0 %1279  ;;  %3033 = vmatprep.subr.bf16.mxu0 %v3343_v30 }
 0x22f   : > { %v825_v49 = vmul.f32 0.0078125, %v809_v38  ;;  %v856_v33 = vmul.f32 %v4453_v31, %v4453_v31  ;;  %3034 = vmatpush3.bf16.msra.mxu0 %v3343_v30  ;;  %v1322_v30 = vmul.f32 %v4483_v24, %v4483_v24 }
 0x231   : > { %886 = vadd.xlane.f32.xlu0 %v856_v33  ;;  %v4463_v57 = vsub.f32 %v4203_v7, %v825_v49  ;;  %v3344_v7 = vld [vmem:[#allocation8 + $0x38] sm:$0xff]   ;;  %v1321_v49 = vmul.f32 %v4474_v25, %v4474_v25  ;;  %v4517_v25 = vsub.f32 %v4174_v48, %v1294_v13  ;;  %v4531_v48 = vsub.f32 %v4190_v56, %v1296_v5  ;;  %v4550_v5 = vld [vmem:[#allocation8 + $0x40] sm:$0xff]  }
 0x232   : > { %v1282_v11 = vpop.xlane.xlu1 %1281  ;;  %v1725_v41 = vpop.xlane.xlu0 %1724  ;;  %3035 = vmatprep.subr.bf16.mxu0 %v3344_v7 }
 0x233   : > { %v857_v9 = vmul.f32 %v4463_v57, %v4463_v57  ;;  %3036 = vmatpush3.bf16.msra.mxu0 %v3344_v7  ;;  %v4496_v7 = vsub.f32 %v4150_v37, %v1291_v27  ;;  %v4510_v37 = vsub.f32 %v4166_v45, %v1293_v14  ;;  %5364 = vst [vmem:[#allocation38_spill] sm:$0xff] %v4517_v25  ;;  %v1298_v14 = vmul.f32 0.0078125, %v1282_v11 }
 0x234   : > { %v1326_v32 = vmul.f32 %v4517_v25, %v4517_v25  ;;  %v1756_v13 = vmul.f32 0.0078125, %v1725_v41  ;;  %v1328_v25 = vmul.f32 %v4531_v48, %v4531_v48  ;;  %3053 = vmatprep.subr.bf16.mxu0 %v4550_v5 }
 0x235   : > { %888 = vadd.xlane.f32.xlu1 %v857_v9  ;;  %1339 = vadd.xlane.f32.xlu0 %v1319_v21  ;;  %5363 = vst [vmem:[#allocation37_spill] sm:$0xff] %v4496_v7  ;;  %v1323_v24 = vmul.f32 %v4496_v7, %v4496_v7  ;;  %v1324_v7 = vmul.f32 %v4507_v43, %v4507_v43 }
 0x236   : > { %v1727_v33 = vpop.xlane.xlu1 %1726  ;;  %v4476_v38 = vpop.xlane.xlu0 %2197  ;;  %v1325_v40 = vmul.f32 %v4510_v37, %v4510_v37  ;;  %v4543_v56 = vsub.f32 %v4214_v15, %v1298_v14 }
 0x239   : > { %1341 = vadd.xlane.f32.xlu1 %v1320_v22  ;;  %1343 = vadd.xlane.f32.xlu0 %v1321_v49 }
 0x23a   : > { %v4485_v29 = vpop.xlane.xlu1 %2199  ;;  %v1729_v2 = vpop.xlane.xlu0 %1728 }
 0x23b   : > { %v1758_v11 = vmul.f32 0.0078125, %v1729_v2  ;;  %v1330_v2 = vmul.f32 %v4543_v56, %v4543_v56 }
 0x23d   : > { %1345 = vadd.xlane.f32.xlu1 %v1322_v30  ;;  %2221 = vadd.xlane.f32.xlu0 %v4316_v55  ;;  %v1295_v30 = vmul.f32 0.0078125, %v4440_v19  ;;  %v1297_v19 = vmul.f32 0.0078125, %v1280_v54  ;;  %v4559_v15 = vsub.f32 %v4233_v26, %v1758_v11 }
 0x23e   : > { %v1731_v21 = vpop.xlane.xlu1 %1730  ;;  %v4491_v9 = vpop.xlane.xlu0 %2201 }
 0x23f   : > { %v4524_v45 = vsub.f32 %v4182_v53, %v1295_v30  ;;  %v4534_v54 = vsub.f32 %v4200_v4, %v1297_v19  ;;  %v4546_v4 = vsub.f32 %v4217_v58, %v1756_v13  ;;  %v1759_v19 = vmul.f32 0.0078125, %v1731_v21 }
 0x240   : > { %v1790_v11 = vmul.f32 %v4559_v15, %v4559_v15 }
 0x241   : > { %2223 = vadd.xlane.f32.xlu1 %v4324_v28  ;;  %2225 = vadd.xlane.f32.xlu0 %v4331_v18  ;;  %v1327_v53 = vmul.f32 %v4524_v45, %v4524_v45  ;;  %v1329_v41 = vmul.f32 %v4534_v54, %v4534_v54 }
 0x242   : > { %v4501_v22 = vpop.xlane.xlu1 %2203  ;;  %v1733_v49 = vpop.xlane.xlu0 %1732 }
 0x243   : > { %v1760_v58 = vmul.f32 0.0078125, %v1733_v49 }
 0x245   : > { %2227 = vadd.xlane.f32.xlu1 %v4338_v61  ;;  %1347 = vadd.xlane.f32.xlu0 %v1323_v24  ;;  %v4573_v26 = vsub.f32 %v4249_v42, %v1760_v58 }
 0x246   : > { %v1735_v16 = vpop.xlane.xlu1 %1734  ;;  %v4514_v27 = vpop.xlane.xlu0 %2205 }
 0x247   : > { %v1761_v49 = vmul.f32 0.0078125, %v1735_v16 }
 0x249   : > { %1349 = vadd.xlane.f32.xlu1 %v1324_v7  ;;  %1351 = vadd.xlane.f32.xlu0 %v1325_v40  ;;  %v1757_v7 = vmul.f32 0.0078125, %v1727_v33 }
 0x24a   : > { %v4526_v24 = vpop.xlane.xlu1 %2207  ;;  %v1737_v6 = vpop.xlane.xlu0 %1736 }
 0x24b   : > { %v4553_v33 = vsub.f32 %v4225_v20, %v1757_v7  ;;  %v4566_v20 = vsub.f32 %v4241_v34, %v1759_v19  ;;  %v1762_v7 = vmul.f32 0.0078125, %v1737_v6  ;;  %v1792_v6 = vmul.f32 %v4573_v26, %v4573_v26 }
 0x24d   : > { %1353 = vadd.xlane.f32.xlu1 %v1326_v32  ;;  %1355 = vadd.xlane.f32.xlu0 %v1327_v53  ;;  %5365 = vst [vmem:[#allocation39_spill] sm:$0xff] %v4553_v33  ;;  %v1789_v13 = vmul.f32 %v4553_v33, %v4553_v33  ;;  %v1791_v19 = vmul.f32 %v4566_v20, %v4566_v20 }
 0x24e   : > { %v1739_v30 = vpop.xlane.xlu1 %1738  ;;  %v4538_v40 = vpop.xlane.xlu0 %2209  ;;  %v4585_v42 = vsub.f32 %v4265_v59, %v1762_v7 }
 0x251   : > { %1357 = vadd.xlane.f32.xlu1 %v1328_v25  ;;  %1359 = vadd.xlane.f32.xlu0 %v1329_v41  ;;  %v1788_v25 = vmul.f32 %v4546_v4, %v4546_v4  ;;  %v1763_v41 = vmul.f32 0.0078125, %v1739_v30 }
 0x252   : > { %v4555_v32 = vpop.xlane.xlu1 %2211  ;;  %v1741_v53 = vpop.xlane.xlu0 %1740 }
 0x253   : > { %v1764_v16 = vmul.f32 0.0078125, %v1741_v53  ;;  %v4590_v30 = vsub.f32 %v4273_v3, %v1763_v41  ;;  %v1794_v53 = vmul.f32 %v4585_v42, %v4585_v42 }
 0x255   : > { %1361 = vadd.xlane.f32.xlu1 %v1330_v2  ;;  %1804 = vadd.xlane.f32.xlu0 %v1788_v25  ;;  %v4582_v25 = vsub.f32 %v4257_v50, %v1761_v49  ;;  %v4595_v33 = vsub.f32 %v4281_v60, %v1764_v16  ;;  %v1795_v7 = vmul.f32 %v4590_v30, %v4590_v30 }
 0x256   : > { %v1743_v21 = vpop.xlane.xlu1 %1742  ;;  %v4568_v14 = vpop.xlane.xlu0 %2213 }
 0x257   : > { %v1765_v58 = vmul.f32 0.0078125, %v1743_v21  ;;  %v1793_v59 = vmul.f32 %v4582_v25, %v4582_v25 }
 0x259   : > { %1806 = vadd.xlane.f32.xlu1 %v1789_v13  ;;  %1808 = vadd.xlane.f32.xlu0 %v1790_v11  ;;  %v4602_v49 = vsub.f32 %v4289_v35, %v1765_v58 }
 0x25a   : > { %v4577_v2 = vpop.xlane.xlu1 %2215  ;;  %v1745_v34 = vpop.xlane.xlu0 %1744 }
 0x25b   : > { %v1766_v50 = vmul.f32 0.0078125, %v1745_v34  ;;  %v1797_v35 = vmul.f32 %v4602_v49, %v4602_v49 }
 0x25d   : > { %1810 = vadd.xlane.f32.xlu1 %v1791_v19  ;;  %1812 = vadd.xlane.f32.xlu0 %v1792_v6  ;;  %v4609_v60 = vsub.f32 %v4297_v51, %v1766_v50  ;;  %v1796_v19 = vmul.f32 %v4595_v33, %v4595_v33 }
 0x25e   : > { %v1747_v13 = vpop.xlane.xlu1 %1746  ;;  %v4592_v11 = vpop.xlane.xlu0 %2217 }
 0x25f   : > { %v1767_v41 = vmul.f32 0.0078125, %v1747_v13  ;;  %v1798_v51 = vmul.f32 %v4609_v60, %v4609_v60  ;;  %v2229_v13 = vmul.f32 0.0078125, %v4476_v38 }
 0x261   : > { %1814 = vadd.xlane.f32.xlu1 %v1793_v59  ;;  %1816 = vadd.xlane.f32.xlu0 %v1794_v53  ;;  %v4616_v6 = vsub.f32 %v4305_v12, %v1767_v41 }
 0x262   : > { %v4604_v3 = vpop.xlane.xlu1 %2219  ;;  %v1749_v21 = vpop.xlane.xlu0 %1748 }
 0x263   : > { %v1768_v34 = vmul.f32 0.0078125, %v1749_v21  ;;  %v1799_v12 = vmul.f32 %v4616_v6, %v4616_v6 }
 0x265   : > { %1818 = vadd.xlane.f32.xlu1 %v1795_v7  ;;  %1820 = vadd.xlane.f32.xlu0 %v1796_v19  ;;  %v4619_v58 = vsub.f32 %v4313_v39, %v1768_v34  ;;  %v5366_v19 = vld [vmem:[#allocation13_spill] sm:$0xff] }
 0x266   : > { %v1751_v16 = vpop.xlane.xlu1 %1750  ;;  %v4635_v38 = vsub.f32 %v5366_v19, %v2229_v13 }
 0x267   : > { %v1769_v59 = vmul.f32 0.0078125, %v1751_v16  ;;  %v1800_v39 = vmul.f32 %v4619_v58, %v4619_v58  ;;  %v2231_v16 = vmul.f32 0.0078125, %v4491_v9  ;;  %v2232_v9 = vmul.f32 0.0078125, %v4501_v22 }
 0x268   : > { %5367 = vst [vmem:[#allocation13_spill] sm:$0xff] %v4635_v38  ;;  %v2261_v13 = vmul.f32 %v4635_v38, %v4635_v38  ;;  %v2235_v22 = vmul.f32 0.0078125, %v4538_v40  ;;  %v3351_v38 = vld [vmem:[#allocation8 + $0x70] sm:$0xff]  }
 0x269   : > { %1822 = vadd.xlane.f32.xlu1 %v1797_v35  ;;  %1824 = vadd.xlane.f32.xlu0 %v1798_v51  ;;  %v4625_v53 = vsub.f32 %v4321_v62, %v1769_v59  ;;  %v2230_v62 = vmul.f32 0.0078125, %v4485_v29  ;;  %v5368_v35 = vld [vmem:[#allocation25_spill] sm:$0xff]  ;;  %v5371_v29 = vld [vmem:[#allocation15_spill] sm:$0xff] }
 0x26a   : > { %v1753_v50 = vpop.xlane.xlu0 %1752 }
 0x26b   : > { %v1770_v21 = vmul.f32 0.0078125, %v1753_v50  ;;  %v1801_v51 = vmul.f32 %v4625_v53, %v4625_v53  ;;  %v5369_v50 = vld [vmem:[#allocation14_spill] sm:$0xff] }
 0x26c   : > { %v1755_v7 = vpop.xlane.xlu1 %1754 }
 0x26d   : > { %v4632_v41 = vsub.f32 %v4328_v63, %v1770_v21  ;;  %v1771_v34 = vmul.f32 0.0078125, %v1755_v7  ;;  %1826 = vadd.xlane.f32.xlu1 %v1799_v12  ;;  %1828 = vadd.xlane.f32.xlu0 %v1800_v39  ;;  %v4647_v21 = vsub.f32 %v5369_v50, %v2230_v62  ;;  %v4652_v12 = vsub.f32 %v5371_v29, %v2231_v16  ;;  %v5372_v62 = vld [vmem:[#allocation16_spill] sm:$0xff] }
 0x26e   : > { %v2233_v39 = vmul.f32 0.0078125, %v4514_v27 }
 0x26f   : > { %v4640_v59 = vsub.f32 %v5368_v35, %v1771_v34  ;;  %v1802_v63 = vmul.f32 %v4632_v41, %v4632_v41  ;;  %5370 = vst [vmem:[#allocation25_spill] sm:$0xff] %v4647_v21  ;;  %v2234_v34 = vmul.f32 0.0078125, %v4526_v24  ;;  %v2262_v19 = vmul.f32 %v4647_v21, %v4647_v21 }
 0x270   : > { %v4662_v35 = vsub.f32 %v5372_v62, %v2232_v9  ;;  %v2263_v27 = vmul.f32 %v4652_v12, %v4652_v12  ;;  %v2236_v24 = vmul.f32 0.0078125, %v4555_v32  ;;  %v2237_v9 = vmul.f32 0.0078125, %v4568_v14  ;;  %v5381_v32 = vld [vmem:[#allocation21_spill] sm:$0xff] }
 0x271   : > { %1830 = vadd.xlane.f32.xlu1 %v1801_v51  ;;  %1832 = vadd.xlane.f32.xlu0 %v1802_v63  ;;  %v1803_v7 = vmul.f32 %v4640_v59, %v4640_v59  ;;  %v5373_v51 = vld [vmem:[#allocation17_spill] sm:$0xff]  ;;  %v5375_v63 = vld [vmem:[#allocation18_spill] sm:$0xff]  ;;  %v2239_v14 = vmul.f32 0.0078125, %v4592_v11 }
 0x272   : > { %v4665_v16 = vsub.f32 %v5373_v51, %v2233_v39  ;;  %v4671_v50 = vsub.f32 %v5375_v63, %v2234_v34  ;;  %v2264_v39 = vmul.f32 %v4662_v35, %v4662_v35  ;;  %v4688_v62 = vsub.f32 %v5381_v32, %v2237_v9  ;;  %v5383_v63 = vld [vmem:[#allocation22_spill] sm:$0xff] }
 0x273   : > { %v2238_v51 = vmul.f32 0.0078125, %v4577_v2  ;;  %v2240_v9 = vmul.f32 0.0078125, %v4604_v3 }
 0x274   : > { %5374 = vst [vmem:[#allocation14_spill] sm:$0xff] %v4665_v16  ;;  %5376 = vst [vmem:[#allocation15_spill] sm:$0xff] %v4671_v50  ;;  %v2265_v40 = vmul.f32 %v4665_v16, %v4665_v16  ;;  %v2266_v34 = vmul.f32 %v4671_v50, %v4671_v50  ;;  %v2269_v2 = vmul.f32 %v4688_v62, %v4688_v62 }
 0x275   : > { %1834 = vadd.xlane.f32.xlu1 %v1803_v7  ;;  %2277 = vadd.xlane.f32.xlu0 %v2261_v13  ;;  %v5377_v13 = vld [vmem:[#allocation19_spill] sm:$0xff]  ;;  %v5379_v7 = vld [vmem:[#allocation20_spill] sm:$0xff]  ;;  %5382 = vst [vmem:[#allocation18_spill] sm:$0xff] %v4688_v62 }
 0x276   : > { %v4675_v29 = vsub.f32 %v5377_v13, %v2235_v22  ;;  %v5385_v13 = vld [vmem:[#allocation23_spill] sm:$0xff] }
 0x278   : > { %5378 = vst [vmem:[#allocation16_spill] sm:$0xff] %v4675_v29  ;;  %v2267_v22 = vmul.f32 %v4675_v29, %v4675_v29 }
 0x279   : > { %2279 = vadd.xlane.f32.xlu1 %v2262_v19  ;;  %2281 = vadd.xlane.f32.xlu0 %v2263_v27  ;;  %v4683_v19 = vsub.f32 %v5379_v7, %v2236_v24  ;;  %v4697_v24 = vsub.f32 %v5383_v63, %v2238_v51 }
 0x27b   : > { %5380 = vst [vmem:[#allocation17_spill] sm:$0xff] %v4683_v19  ;;  %v2268_v27 = vmul.f32 %v4683_v19, %v4683_v19  ;;  %5384 = vst [vmem:[#allocation19_spill] sm:$0xff] %v4697_v24  ;;  %v2270_v32 = vmul.f32 %v4697_v24, %v4697_v24 }
 0x27d   : > { %2283 = vadd.xlane.f32.xlu1 %v2264_v39  ;;  %2285 = vadd.xlane.f32.xlu0 %v2265_v40  ;;  %v4700_v39 = vsub.f32 %v5385_v13, %v2239_v14  ;;  %v5387_v40 = vld [vmem:[#allocation24_spill] sm:$0xff] }
 0x27e   : > { %v4706_v7 = vsub.f32 %v5387_v40, %v2240_v9 }
 0x27f   : > { %5386 = vst [vmem:[#allocation20_spill] sm:$0xff] %v4700_v39  ;;  %v2271_v51 = vmul.f32 %v4700_v39, %v4700_v39 }
 0x280   : > { %5388 = vst [vmem:[#allocation21_spill] sm:$0xff] %v4706_v7 }
 0x281   : > { %2287 = vadd.xlane.f32.xlu1 %v2266_v34  ;;  %2289 = vadd.xlane.f32.xlu0 %v2267_v22  ;;  %v2272_v22 = vmul.f32 %v4706_v7, %v4706_v7 }
 0x285   : > { %2291 = vadd.xlane.f32.xlu1 %v2268_v27  ;;  %2293 = vadd.xlane.f32.xlu0 %v2269_v2 }
 0x286   : > { %v859_v11 = vpop.xlane.xlu0 %858 }
 0x287   : > { %v890_v34 = vmul.f32 0.0078125, %v859_v11 }
 0x289   : > { %v906_v14 = vadd.f32 1e-05, %v890_v34  ;;  %2295 = vadd.xlane.f32.xlu1 %v2270_v32  ;;  %2297 = vadd.xlane.f32.xlu0 %v2271_v51 }
 0x28a   : > { %v1332_v3 = vpop.xlane.xlu0 %1331 }
 0x28b   : > { %3369 = vrsqrt.f32 %v906_v14 }
 0x28d   : > { %2299 = vadd.xlane.f32.xlu1 %v2272_v22 }
 0x28e   : > { %v861_v27 = vpop.xlane.xlu1 %860  ;;  %v863_v63 = vpop.xlane.xlu0 %862 }
 0x28f   : > { %v891_v13 = vmul.f32 0.0078125, %v861_v27  ;;  %v892_v9 = vmul.f32 0.0078125, %v863_v63 }
 0x291   : > { %v907_v2 = vadd.f32 1e-05, %v891_v13  ;;  %v908_v11 = vadd.f32 1e-05, %v892_v9 }
 0x292   : > { %v1334_v40 = vpop.xlane.xlu1 %1333  ;;  %v4714_v24 = vpop.xlane.xlu0 %1335 }
 0x293   : > { %3371 = vrsqrt.f32 %v907_v2 }
 0x294   : > { %3373 = vrsqrt.f32 %v908_v11 }
 0x295   : > { %v3370_v34 = vpop.eup %3369 }
 0x296   : > { %v865_v32 = vpop.xlane.xlu1 %864  ;;  %v867_v51 = vpop.xlane.xlu0 %866  ;;  %v938_v14 = vmul.f32 %v3370_v34, %v4342_v36 }
 0x297   : > { %v893_v39 = vmul.f32 0.0078125, %v865_v32  ;;  %v894_v62 = vmul.f32 0.0078125, %v867_v51 }
 0x298   : > { %v970_v19 = vmul.f32 1.442695, %v938_v14  ;;  %vm954_vm0 = vcmp.gt.f32.partialorder %v938_v14, 0.0 }
 0x299   : > { %v909_v7 = vadd.f32 1e-05, %v893_v39  ;;  %v910_v22 = vadd.f32 1e-05, %v894_v62 }
 0x29a   : > { %v1338_v29 = vpop.xlane.xlu1 %1337 }
 0x29b   : > { %3375 = vrsqrt.f32 %v909_v7 }
 0x29c   : > { %3377 = vrsqrt.f32 %v910_v22 }
 0x29d   : > { %v3372_v27 = vpop.eup %3371  ;;  %3379 = vpow2.f32 %v970_v19 }
 0x29e   : > { %v3374_v63 = vpop.eup %3373  ;;  %v869_v13 = vpop.xlane.xlu1 %868  ;;  %v939_v2 = vmul.f32 %v3372_v27, %v4355_v47 }
 0x29f   : > { %v871_v9 = vpop.xlane.xlu0 %870  ;;  %v895_v11 = vmul.f32 0.0078125, %v869_v13  ;;  %v4719_v16 = vmul.f32 %v3374_v63, %v4352_v1 }
 0x2a0   : > { %v896_v50 = vmul.f32 0.0078125, %v871_v9  ;;  %v972_v36 = vmul.f32 1.442695, %v939_v2  ;;  %vm955_vm1 = vcmp.gt.f32.partialorder %v939_v2, 0.0 }
 0x2a1   : > { %v911_v34 = vadd.f32 1e-05, %v895_v11  ;;  %v974_v7 = vmul.f32 1.442695, %v4719_v16  ;;  %vm956_vm2 = vcmp.gt.f32.partialorder %v4719_v16, 0.0 }
 0x2a2   : > { %v912_v39 = vadd.f32 1e-05, %v896_v50  ;;  %v873_v62 = vpop.xlane.xlu1 %872  ;;  %3381 = vpow2.f32 %v972_v36  ;;  %v1363_v50 = vmul.f32 0.0078125, %v1332_v3 }
 0x2a3   : > { %3383 = vrsqrt.f32 %v911_v34  ;;  %v897_v32 = vmul.f32 0.0078125, %v873_v62 }
 0x2a4   : > { %3385 = vrsqrt.f32 %v912_v39  ;;  %v1379_v62 = vadd.f32 1e-05, %v1363_v50 }
 0x2a5   : > { %v3376_v19 = vpop.eup %3375  ;;  %v913_v51 = vadd.f32 1e-05, %v897_v32  ;;  %3387 = vpow2.f32 %v974_v7  ;;  %v1364_v32 = vmul.f32 0.0078125, %v1334_v40 }
 0x2a6   : > { %v3378_v22 = vpop.eup %3377  ;;  %v875_v21 = vpop.xlane.xlu0 %874  ;;  %v4723_v47 = vmul.f32 %v3376_v19, %v4372_v44 }
 0x2a7   : > { %v3380_v1 = vpop.eup %3379  ;;  %v898_v27 = vmul.f32 0.0078125, %v875_v21  ;;  %v4726_v63 = vmul.f32 %v3378_v22, %v4375_v10  ;;  %3389 = vrsqrt.f32 %v913_v51 }
 0x2a8   : > { %v976_v13 = vmul.f32 1.442695, %v4723_v47  ;;  %v2854_v36 = vadd.f32 -1.0, %v3380_v1  ;;  %vm957_vm3 = vcmp.gt.f32.partialorder %v4723_v47, 0.0 }
 0x2a9   : > { %v914_v9 = vadd.f32 1e-05, %v898_v27  ;;  %v978_v34 = vmul.f32 1.442695, %v4726_v63  ;;  %vm958_vm4 = vcmp.gt.f32.partialorder %v4726_v63, 0.0 }
 0x2aa   : > { %v877_v11 = vpop.xlane.xlu1 %876  ;;  %3391 = vpow2.f32 %v976_v13  ;;  %v1018_v51 = vsel %vm954_vm0, %v938_v14, %v2854_v36  ;;  %v1380_v36 = vadd.f32 1e-05, %v1364_v32 }
 0x2ab   : > { %3393 = vrsqrt.f32 %v914_v9  ;;  %v899_v39 = vmul.f32 0.0078125, %v877_v11  ;;  %v1366_v9 = vmul.f32 0.0078125, %v1338_v29 }
 0x2ac   : > { %v3382_v44 = vpop.eup %3381  ;;  %3395 = vpow2.f32 %v978_v34 }
 0x2ad   : > { %v3384_v7 = vpop.eup %3383  ;;  %v915_v21 = vadd.f32 1e-05, %v899_v39  ;;  %v2855_v10 = vadd.f32 -1.0, %v3382_v44  ;;  %v1382_v29 = vadd.f32 1e-05, %v1366_v9 }
 0x2ae   : > { %v3386_v19 = vpop.eup %3385  ;;  %v879_v3 = vpop.xlane.xlu0 %878  ;;  %v4731_v22 = vmul.f32 %v3384_v7, %v4391_v23 }
 0x2af   : > { %3397 = vrsqrt.f32 %v915_v21  ;;  %v900_v1 = vmul.f32 0.0078125, %v879_v3  ;;  %v1019_v27 = vsel %vm955_vm1, %v939_v2, %v2855_v10  ;;  %v4734_v13 = vmul.f32 %v3386_v19, %v4394_v52  ;;  %v3388_v50 = vpop.eup %3387 }
 0x2b0   : > { %v1050_v40 = vpack.c.bf16 %v1019_v27, %v1018_v51  ;;  %v980_v11 = vmul.f32 1.442695, %v4731_v22  ;;  %3399 = vrsqrt.f32 %v1379_v62  ;;  %v2856_v2 = vadd.f32 -1.0, %v3388_v50 }
 0x2b1   : > { %v916_v39 = vadd.f32 1e-05, %v900_v1  ;;  %v982_v44 = vmul.f32 1.442695, %v4734_v13  ;;  %v3390_v14 = vpop.eup %3389  ;;  %v1365_v62 = vmul.f32 0.0078125, %v4714_v24  ;;  %vm959_vm5 = vcmp.gt.f32.partialorder %v4731_v22, 0.0 }
 0x2b2   : > { %v881_v23 = vpop.xlane.xlu1 %880  ;;  %3037 = vmatprep.mubr.bf16.mxu0 %v1050_v40  ;;  %3401 = vpow2.f32 %v980_v11  ;;  %v4739_v52 = vmul.f32 %v3390_v14, %v4403_v8  ;;  %v1020_v1 = vsel %vm956_vm2, %v4719_v16, %v2856_v2  ;;  %v3346_v40 = vld [vmem:[#allocation8 + $0x48] sm:$0xff]   ;;  %vm960_vm6 = vcmp.gt.f32.partialorder %v4734_v13, 0.0 }
 0x2b3   : > { %3403 = vrsqrt.f32 %v916_v39  ;;  %v901_v34 = vmul.f32 0.0078125, %v881_v23  ;;  %v1381_v39 = vadd.f32 1e-05, %v1365_v62 }
 0x2b4   : > { %v3392_v7 = vpop.eup %3391  ;;  %3405 = vpow2.f32 %v982_v44  ;;  %v984_v3 = vmul.f32 1.442695, %v4739_v52  ;;  %vm961_vm7 = vcmp.gt.f32.partialorder %v4739_v52, 0.0 }
 0x2b5   : > { %v3394_v21 = vpop.eup %3393  ;;  %v917_v10 = vadd.f32 1e-05, %v901_v34  ;;  %v2857_v19 = vadd.f32 -1.0, %v3392_v7  ;;  %3407 = vrsqrt.f32 %v1380_v36  ;;  %v3347_v7 = vld [vmem:[#allocation8 + $0x50] sm:$0xff]  }
 0x2b6   : > { %v883_v32 = vpop.xlane.xlu0 %882  ;;  %v4746_v51 = vmul.f32 %v3394_v21, %v4410_v17  ;;  %v3396_v24 = vpop.eup %3395  ;;  %v5389_v17 = vld [vmem:[#allocation30_spill] sm:$0xff] }
 0x2b7   : > { %3409 = vrsqrt.f32 %v917_v10  ;;  %v902_v8 = vmul.f32 0.0078125, %v883_v32  ;;  %v1021_v27 = vsel %vm957_vm3, %v4723_v47, %v2857_v19  ;;  %v2858_v47 = vadd.f32 -1.0, %v3396_v24 }
 0x2b8   : > { %v1051_v50 = vpack.c.bf16 %v1021_v27, %v1020_v1  ;;  %3411 = vpow2.f32 %v984_v3  ;;  %v986_v9 = vmul.f32 1.442695, %v4746_v51  ;;  %v5390_v3 = vld [vmem:[#allocation31_spill] sm:$0xff]  ;;  %vm962_vm8 = vcmp.gt.f32.partialorder %v4746_v51, 0.0 }
 0x2b9   : > { %v3398_v11 = vpop.eup %3397  ;;  %3413 = vrsqrt.f32 %v1382_v29  ;;  %v918_v44 = vadd.f32 1e-05, %v902_v8  ;;  %v1022_v8 = vsel %vm958_vm4, %v4726_v63, %v2858_v47  ;;  %v5392_v63 = vld [vmem:[#allocation26_spill] sm:$0xff] }
 0x2ba   : > { %v885_v14 = vpop.xlane.xlu1 %884  ;;  %3038 = vmatmul.mubr.bf16.vlgmr.msra.gmra.mrb[0].mxu0 %v1051_v50  ;;  %v4752_v36 = vmul.f32 %v3398_v11, %v5389_v17  ;;  %3415 = vpow2.f32 %v986_v9  ;;  %v3400_v23 = vpop.eup %3399  ;;  %v3348_v9 = vld [vmem:[#allocation8 + $0x58] sm:$0xff]  }
 0x2bb   : > { %3417 = vrsqrt.f32 %v918_v44  ;;  %v903_v16 = vmul.f32 0.0078125, %v885_v14  ;;  %3054 = vmatpush3.bf16.msra.mxu0 %v4550_v5 }
 0x2bc   : > { %v3402_v34 = vpop.eup %3401  ;;  %v988_v2 = vmul.f32 1.442695, %v4752_v36  ;;  %3055 = vmatprep.subr.bf16.mxu0 %v3346_v40  ;;  %3419 = vrsqrt.f32 %v1381_v39  ;;  %vm963_vm9 = vcmp.gt.f32.partialorder %v4752_v36, 0.0 }
 0x2bd   : > { %v3404_v21 = vpop.eup %3403  ;;  %v919_v29 = vadd.f32 1e-05, %v903_v16  ;;  %v2859_v62 = vadd.f32 -1.0, %v3402_v34  ;;  %v5391_v34 = vld [vmem:[#allocation32_spill] sm:$0xff] }
 0x2be   : > { %v3406_v10 = vpop.eup %3405  ;;  %v887_v19 = vpop.xlane.xlu0 %886  ;;  %3421 = vpow2.f32 %v988_v2  ;;  %v4759_v32 = vmul.f32 %v3404_v21, %v5390_v3  ;;  %v5393_v3 = vld [vmem:[#allocation27_spill] sm:$0xff] }
 0x2bf   : > { %3423 = vrsqrt.f32 %v919_v29  ;;  %v904_v5 = vmul.f32 0.0078125, %v887_v19  ;;  %v1023_v1 = vsel %vm959_vm5, %v4731_v22, %v2859_v62  ;;  %3056 = vmatpush3.bf16.msra.mxu0 %v3346_v40  ;;  %v3408_v27 = vpop.eup %3407  ;;  %v2860_v44 = vadd.f32 -1.0, %v3406_v10  ;;  %v3349_v19 = vld [vmem:[#allocation8 + $0x60] sm:$0xff]  }
 0x2c0   : > { %v1052_v24 = vpack.c.bf16 %v1023_v1, %v1022_v8  ;;  %v990_v50 = vmul.f32 1.442695, %v4759_v32  ;;  %3057 = vmatprep.subr.bf16.mxu0 %v3347_v7  ;;  %v4768_v22 = vmul.f32 %v3400_v23, %v5392_v63  ;;  %vm964_vm10 = vcmp.gt.f32.partialorder %v4759_v32, 0.0 }
 0x2c1   : > { %v3410_v11 = vpop.eup %3409  ;;  %v920_v39 = vadd.f32 1e-05, %v904_v5  ;;  %v4774_v5 = vmul.f32 %v3408_v27, %v5393_v3  ;;  %v5395_v3 = vld [vmem:[#allocation29_spill] sm:$0xff] }
 0x2c2   : > { %v3412_v14 = vpop.eup %3411  ;;  %v889_v17 = vpop.xlane.xlu1 %888  ;;  %3041 = vmatprep.mubr.bf16.mxu0 %v1052_v24  ;;  %v4765_v2 = vmul.f32 %v3410_v11, %v5391_v34  ;;  %3425 = vpow2.f32 %v990_v50  ;;  %v1024_v24 = vsel %vm960_vm6, %v4734_v13, %v2860_v44  ;;  %v3350_v44 = vld [vmem:[#allocation8 + $0x68] sm:$0xff]   ;;  %vm1427_vm14 = vcmp.gt.f32.partialorder %v4768_v22, 0.0 }
 0x2c3   : > { %v1340_v16 = vpop.xlane.xlu0 %1339  ;;  %v3414_v40 = vpop.eup %3413  ;;  %3427 = vrsqrt.f32 %v920_v39  ;;  %v905_v47 = vmul.f32 0.0078125, %v889_v17  ;;  %v2861_v29 = vadd.f32 -1.0, %v3412_v14  ;;  %3058 = vmatpush3.bf16.msra.mxu0 %v3347_v7  ;;  %v5394_v17 = vld [vmem:[#allocation33_spill] sm:$0xff]  ;;  %vm1428_vm15 = vcmp.gt.f32.partialorder %v4774_v5, 0.0 }
 0x2c4   : > { %v1367_v21 = vmul.f32 0.0078125, %v1340_v16  ;;  %v3416_v62 = vpop.eup %3415  ;;  %v992_v10 = vmul.f32 1.442695, %v4765_v2  ;;  %3059 = vmatprep.subr.bf16.mxu0 %v3348_v9  ;;  %v4783_v13 = vmul.f32 %v3414_v40, %v5395_v3  ;;  %vm965_vm11 = vcmp.gt.f32.partialorder %v4765_v2, 0.0 }
 0x2c5   : > { %v3418_v23 = vpop.eup %3417  ;;  %v921_v8 = vadd.f32 1e-05, %v905_v47  ;;  %v1025_v50 = vsel %vm961_vm7, %v4739_v52, %v2861_v29  ;;  %v2862_v14 = vadd.f32 -1.0, %v3416_v62  ;;  %v1443_v47 = vmul.f32 1.442695, %v4768_v22 }
 0x2c6   : > { %v1383_v1 = vadd.f32 1e-05, %v1367_v21  ;;  %v1342_v7 = vpop.xlane.xlu1 %1341  ;;  %v1053_v11 = vpack.c.bf16 %v1025_v50, %v1024_v24  ;;  %3429 = vpow2.f32 %v992_v10  ;;  %v4779_v16 = vmul.f32 %v3418_v23, %v5394_v17  ;;  %v3420_v34 = vpop.eup %3419 }
 0x2c7   : > { %v1344_v39 = vpop.xlane.xlu0 %1343  ;;  %3431 = vrsqrt.f32 %v921_v8  ;;  %v1368_v63 = vmul.f32 0.0078125, %v1342_v7  ;;  %3060 = vmatpush3.bf16.msra.mxu0 %v3348_v9  ;;  %v1445_v29 = vmul.f32 1.442695, %v4774_v5  ;;  %v1026_v40 = vsel %vm962_vm8, %v4746_v51, %v2862_v14 }
 0x2c8   : > { %v1369_v27 = vmul.f32 0.0078125, %v1344_v39  ;;  %v3422_v21 = vpop.eup %3421  ;;  %3433 = vrsqrt.f32 %v1383_v1  ;;  %3042 = vmatmul.mubr.bf16.gmra.mrb[4].mxu0 %v1053_v11  ;;  %v994_v52 = vmul.f32 1.442695, %v4779_v16  ;;  %3061 = vmatprep.subr.bf16.mxu0 %v3349_v19  ;;  %v5396_v1 = vld [vmem:[#allocation34_spill] sm:$0xff]  ;;  %v1449_v14 = vmul.f32 1.442695, %v4783_v13 }
 0x2c9   : > { %v3424_v62 = vpop.eup %3423  ;;  %v1384_v10 = vadd.f32 1e-05, %v1368_v63  ;;  %v2863_v9 = vadd.f32 -1.0, %v3422_v21  ;;  %v5397_v63 = vld [vmem:[#allocation28_spill] sm:$0xff]  ;;  %vm966_vm12 = vcmp.gt.f32.partialorder %v4779_v16, 0.0  ;;  %vm1430_vm3 = vcmp.gt.f32.partialorder %v4783_v13, 0.0 }
 0x2ca   : > { %v1385_v23 = vadd.f32 1e-05, %v1369_v27  ;;  %v1346_v8 = vpop.xlane.xlu1 %1345  ;;  %v4791_v50 = vmul.f32 %v3424_v62, %v5396_v1  ;;  %3435 = vpow2.f32 %v994_v52  ;;  %v4795_v27 = vmul.f32 %v3420_v34, %v5397_v63 }
 0x2cb   : > { %v2222_v24 = vpop.xlane.xlu0 %2221  ;;  %3437 = vrsqrt.f32 %v1384_v10  ;;  %v1370_v7 = vmul.f32 0.0078125, %v1346_v8  ;;  %v1027_v39 = vsel %vm963_vm9, %v4752_v36, %v2863_v9  ;;  %3062 = vmatpush3.bf16.msra.mxu0 %v3349_v19 }
 0x2cc   : > { %v2241_v11 = vmul.f32 0.0078125, %v2222_v24  ;;  %v3426_v17 = vpop.eup %3425  ;;  %v1054_v21 = vpack.c.bf16 %v1027_v39, %v1026_v40  ;;  %v996_v3 = vmul.f32 1.442695, %v4791_v50  ;;  %3063 = vmatprep.subr.bf16.mxu0 %v3350_v44  ;;  %3439 = vpow2.f32 %v1445_v29  ;;  %v3352_v40 = vld [vmem:[#allocation8 + $0x78] sm:$0xff]  }
 0x2cd   : > { %v3428_v51 = vpop.eup %3427  ;;  %3441 = vrsqrt.f32 %v1385_v23  ;;  %v1386_v52 = vadd.f32 1e-05, %v1370_v7  ;;  %v1447_v23 = vmul.f32 1.442695, %v4795_v27  ;;  %v2864_v24 = vadd.f32 -1.0, %v3426_v17 }
 0x2ce   : > { %v4800_v62 = vsub.f32 %v4316_v55, %v2241_v11  ;;  %v2224_v36 = vpop.xlane.xlu1 %2223  ;;  %3045 = vmatprep.mubr.bf16.mxu0 %v1054_v21  ;;  %3443 = vpow2.f32 %v996_v3  ;;  %v4803_v34 = vmul.f32 %v3428_v51, %v4453_v31  ;;  %vm967_vm13 = vcmp.gt.f32.partialorder %v4791_v50, 0.0 }
 0x2cf   : > { %v2226_v19 = vpop.xlane.xlu0 %2225  ;;  %3445 = vrsqrt.f32 %v1386_v52  ;;  %v2242_v10 = vmul.f32 0.0078125, %v2224_v36  ;;  %3064 = vmatpush3.bf16.msra.mxu0 %v3350_v44  ;;  %v1028_v51 = vsel %vm964_vm10, %v4759_v32, %v2864_v24  ;;  %vm1429_vm0 = vcmp.gt.f32.partialorder %v4795_v27, 0.0 }
 0x2d0   : > { %v2243_v9 = vmul.f32 0.0078125, %v2226_v19  ;;  %v2273_v29 = vmul.f32 %v4800_v62, %v4800_v62  ;;  %v3430_v8 = vpop.eup %3429  ;;  %v998_v55 = vmul.f32 1.442695, %v4803_v34  ;;  %3065 = vmatprep.subr.bf16.mxu0 %v3351_v38  ;;  %3447 = vpow2.f32 %v1443_v47 }
 0x2d1   : > { %v3432_v1 = vpop.eup %3431  ;;  %3449 = vpow2.f32 %v1449_v14  ;;  %v4810_v31 = vsub.f32 %v4324_v28, %v2242_v10  ;;  %v2865_v11 = vadd.f32 -1.0, %v3430_v8  ;;  %vm968_vm1 = vcmp.gt.f32.partialorder %v4803_v34, 0.0 }
 0x2d2   : > { %v4813_v7 = vsub.f32 %v4331_v18, %v2243_v9  ;;  %2301 = vadd.xlane.f32.xlu0 %v2273_v29  ;;  %v3434_v44 = vpop.eup %3433  ;;  %v2228_v39 = vpop.xlane.xlu1 %2227  ;;  %v4818_v47 = vmul.f32 %v3432_v1, %v4463_v57  ;;  %3451 = vpow2.f32 %v998_v55  ;;  %v4833_v9 = vld [vmem:[#allocation8 + $0x80] sm:$0xff]  }
 0x2d3   : > { %v1348_v63 = vpop.xlane.xlu0 %1347  ;;  %v2244_v17 = vmul.f32 0.0078125, %v2228_v39  ;;  %v2274_v28 = vmul.f32 %v4810_v31, %v4810_v31  ;;  %3066 = vmatpush3.bf16.msra.mxu0 %v3351_v38  ;;  %v1029_v14 = vsel %vm965_vm11, %v4765_v2, %v2865_v11  ;;  %v4828_v57 = vmul.f32 %v3434_v44, %v4456_v46 }
 0x2d4   : > { %v1371_v21 = vmul.f32 0.0078125, %v1348_v63  ;;  %v2275_v18 = vmul.f32 %v4813_v7, %v4813_v7  ;;  %v3436_v3 = vpop.eup %3435  ;;  %v1000_v52 = vmul.f32 1.442695, %v4818_v47  ;;  %3067 = vmatprep.subr.bf16.mxu0 %v3352_v40  ;;  %3453 = vpow2.f32 %v1447_v23 }
 0x2d5   : > { %v3438_v36 = vpop.eup %3437  ;;  %v4831_v19 = vsub.f32 %v4338_v61, %v2244_v17  ;;  %2303 = vadd.xlane.f32.xlu1 %v2274_v28  ;;  %v1055_v38 = vpack.c.bf16 %v1029_v14, %v1028_v51  ;;  %v2866_v8 = vadd.f32 -1.0, %v3436_v3  ;;  %v1451_v46 = vmul.f32 1.442695, %v4828_v57  ;;  %v5398_v51 = vld [vmem:[#allocation35_spill] sm:$0xff] }
 0x2d6   : > { %v1387_v10 = vadd.f32 1e-05, %v1371_v21  ;;  %2305 = vadd.xlane.f32.xlu0 %v2275_v18  ;;  %v3440_v32 = vpop.eup %3439  ;;  %v1350_v29 = vpop.xlane.xlu1 %1349  ;;  %3455 = vpow2.f32 %v1000_v52  ;;  %v4836_v24 = vmul.f32 %v3438_v36, %v4471_v0  ;;  %vm969_vm2 = vcmp.gt.f32.partialorder %v4818_v47, 0.0 }
 0x2d7   : > { %v1352_v2 = vpop.xlane.xlu0 %1351  ;;  %v3442_v23 = vpop.eup %3441  ;;  %v1372_v61 = vmul.f32 0.0078125, %v1350_v29  ;;  %3046 = vmatmul.mubr.bf16.gmra.mrb[8].mxu0 %v1055_v38  ;;  %v2276_v1 = vmul.f32 %v4831_v19, %v4831_v19  ;;  %v1030_v3 = vsel %vm966_vm12, %v4779_v16, %v2866_v8  ;;  %vm1431_vm5 = vcmp.gt.f32.partialorder %v4828_v57, 0.0 }
 0x2d8   : > { %3457 = vrsqrt.f32 %v1387_v10  ;;  %v1373_v55 = vmul.f32 0.0078125, %v1352_v2  ;;  %v3444_v11 = vpop.eup %3443  ;;  %3068 = vmatpush3.bf16.msra.mxu0 %v3352_v40  ;;  %v1453_v44 = vmul.f32 1.442695, %v4836_v24  ;;  %v4847_v14 = vmul.f32 %v3442_v23, %v5398_v51  ;;  %v5399_v40 = vld [vmem:[#allocation36_spill] sm:$0xff] }
 0x2d9   : > { %v3446_v0 = vpop.eup %3445  ;;  %v1388_v39 = vadd.f32 1e-05, %v1372_v61  ;;  %2307 = vadd.xlane.f32.xlu1 %v2276_v1  ;;  %v2867_v17 = vadd.f32 -1.0, %v3444_v11  ;;  %3085 = vmatprep.subr.bf16.mxu0 %v4833_v9  ;;  %3459 = vpow2.f32 %v1451_v46  ;;  %v2879_v61 = vadd.f32 -1.0, %v3440_v32 }
 0x2da   : > { %v1389_v63 = vadd.f32 1e-05, %v1373_v55  ;;  %v3448_v21 = vpop.eup %3447  ;;  %v1354_v28 = vpop.xlane.xlu1 %1353  ;;  %3461 = vpow2.f32 %v1453_v44  ;;  %v4850_v52 = vmul.f32 %v3446_v0, %v5399_v40  ;;  %v1455_v11 = vmul.f32 1.442695, %v4847_v14 }
 0x2db   : > { %v1356_v18 = vpop.xlane.xlu0 %1355  ;;  %v3450_v36 = vpop.eup %3449  ;;  %3463 = vrsqrt.f32 %v1388_v39  ;;  %v1374_v10 = vmul.f32 0.0078125, %v1354_v28  ;;  %v1031_v29 = vsel %vm967_vm13, %v4791_v50, %v2867_v17  ;;  %v1492_v17 = vsel %vm1428_vm15, %v4774_v5, %v2879_v61 }
 0x2dc   : > { %v1375_v38 = vmul.f32 0.0078125, %v1356_v18  ;;  %v3452_v2 = vpop.eup %3451  ;;  %3465 = vrsqrt.f32 %v1389_v63  ;;  %v1056_v46 = vpack.c.bf16 %v1031_v29, %v1030_v3  ;;  %v1457_v44 = vmul.f32 1.442695, %v4850_v52  ;;  %v5400_v29 = vld [vmem:[#allocation37_spill] sm:$0xff] }
 0x2dd   : > { %v1390_v16 = vadd.f32 1e-05, %v1374_v10  ;;  %v2868_v1 = vadd.f32 -1.0, %v3452_v2  ;;  %v2878_v63 = vadd.f32 -1.0, %v3448_v21  ;;  %v2881_v28 = vadd.f32 -1.0, %v3450_v36 }
 0x2de   : > { %v1391_v8 = vadd.f32 1e-05, %v1375_v38  ;;  %v1358_v23 = vpop.xlane.xlu1 %1357  ;;  %3049 = vmatprep.mubr.bf16.mxu0 %v1056_v46  ;;  %v3454_v0 = vpop.eup %3453  ;;  %vm1432_vm4 = vcmp.gt.f32.partialorder %v4836_v24, 0.0  ;;  %vm1434_vm6 = vcmp.gt.f32.partialorder %v4850_v52, 0.0  ;;  %vm1433_vm7 = vcmp.gt.f32.partialorder %v4847_v14, 0.0 }
 0x2df   : > { %v1360_v55 = vpop.xlane.xlu0 %1359  ;;  %3467 = vrsqrt.f32 %v1390_v16  ;;  %v1376_v50 = vmul.f32 0.0078125, %v1358_v23  ;;  %v1032_v21 = vsel %vm968_vm1, %v4803_v34, %v2868_v1  ;;  %v1491_v23 = vsel %vm1427_vm14, %v4768_v22, %v2878_v63 }
 0x2e0   : > { %v1377_v39 = vmul.f32 0.0078125, %v1360_v55  ;;  %v3456_v32 = vpop.eup %3455  ;;  %3469 = vrsqrt.f32 %v1391_v8  ;;  %v2880_v55 = vadd.f32 -1.0, %v3454_v0 }
 0x2e1   : > { %v1392_v3 = vadd.f32 1e-05, %v1376_v50  ;;  %v2869_v40 = vadd.f32 -1.0, %v3456_v32  ;;  %3471 = vpow2.f32 %v1455_v11  ;;  %v1523_v11 = vpack.c.bf16 %v1492_v17, %v1491_v23 }
 0x2e2   : > { %v3458_v18 = vpop.eup %3457  ;;  %v1393_v51 = vadd.f32 1e-05, %v1377_v39  ;;  %v1362_v10 = vpop.xlane.xlu1 %1361  ;;  %3473 = vpow2.f32 %v1457_v44  ;;  %v1493_v17 = vsel %vm1429_vm0, %v4795_v27, %v2880_v55  ;;  %v3354_v55 = vld [vmem:[#allocation8 + $0x88] sm:$0xff]  }
 0x2e3   : > { %v1805_v38 = vpop.xlane.xlu0 %1804  ;;  %v4865_v2 = vmul.f32 %v3458_v18, %v5400_v29  ;;  %v3460_v46 = vpop.eup %3459  ;;  %3475 = vrsqrt.f32 %v1392_v3  ;;  %v1378_v16 = vmul.f32 0.0078125, %v1362_v10  ;;  %v1033_v36 = vsel %vm969_vm2, %v4818_v47, %v2869_v40 }
 0x2e4   : > { %v1836_v5 = vmul.f32 0.0078125, %v1805_v38  ;;  %v3462_v61 = vpop.eup %3461  ;;  %v1057_v8 = vpack.c.bf16 %v1033_v36, %v1032_v21  ;;  %3477 = vrsqrt.f32 %v1393_v51  ;;  %v1494_v47 = vsel %vm1430_vm3, %v4783_v13, %v2881_v28 }
 0x2e5   : > { %v3464_v34 = vpop.eup %3463  ;;  %v1394_v1 = vadd.f32 1e-05, %v1378_v16  ;;  %v2883_v44 = vadd.f32 -1.0, %v3462_v61  ;;  %v1459_v22 = vmul.f32 1.442695, %v4865_v2  ;;  %v2882_v51 = vadd.f32 -1.0, %v3460_v46 }
 0x2e6   : > { %v3466_v50 = vpop.eup %3465  ;;  %v1807_v39 = vpop.xlane.xlu1 %1806  ;;  %3050 = vmatmul.mubr.bf16.gmra.mrb[12].mxu0 %v1057_v8  ;;  %v4875_v18 = vmul.f32 %v3464_v34, %v4507_v43  ;;  %v1852_v63 = vadd.f32 1e-05, %v1836_v5  ;;  %v1524_v46 = vpack.c.bf16 %v1494_v47, %v1493_v17  ;;  %v5401_v5 = vld [vmem:[#allocation38_spill] sm:$0xff]  ;;  %v3355_v17 = vld [vmem:[#allocation8 + $0x90] sm:$0xff]   ;;  %vm1435_vm8 = vcmp.gt.f32.partialorder %v4865_v2, 0.0 }
 0x2e7   : > { %v1809_v32 = vpop.xlane.xlu0 %1808  ;;  %v1837_v0 = vmul.f32 0.0078125, %v1807_v39  ;;  %3069 = vmatprep.mubr.bf16.mxu0 %v1523_v11  ;;  %3479 = vrsqrt.f32 %v1394_v1  ;;  %v1496_v40 = vsel %vm1432_vm4, %v4836_v24, %v2883_v44  ;;  %v4884_v38 = vmul.f32 %v3466_v50, %v4510_v37 }
 0x2e8   : > { %v1838_v3 = vmul.f32 0.0078125, %v1809_v32  ;;  %v1461_v13 = vmul.f32 1.442695, %v4875_v18  ;;  %3481 = vpow2.f32 %v1459_v22  ;;  %v1495_v8 = vsel %vm1431_vm5, %v4828_v57, %v2882_v51 }
 0x2e9   : > { %v3468_v28 = vpop.eup %3467  ;;  %v1853_v10 = vadd.f32 1e-05, %v1837_v0  ;;  %v1525_v37 = vpack.c.bf16 %v1496_v40, %v1495_v8  ;;  %v1463_v34 = vmul.f32 1.442695, %v4884_v38  ;;  %vm1436_vm9 = vcmp.gt.f32.partialorder %v4875_v18, 0.0 }
 0x2ea   : > { %v1854_v43 = vadd.f32 1e-05, %v1838_v3  ;;  %v3470_v21 = vpop.eup %3469  ;;  %v1811_v29 = vpop.xlane.xlu1 %1810  ;;  %3483 = vpow2.f32 %v1461_v13  ;;  %v4888_v27 = vmul.f32 %v3468_v28, %v5401_v5  ;;  %vm1437_vm10 = vcmp.gt.f32.partialorder %v4884_v38, 0.0 }
 0x2eb   : > { %v1813_v16 = vpop.xlane.xlu0 %1812  ;;  %v3472_v24 = vpop.eup %3471  ;;  %3485 = vrsqrt.f32 %v1852_v63  ;;  %v1839_v36 = vmul.f32 0.0078125, %v1811_v29  ;;  %v4894_v50 = vmul.f32 %v3470_v21, %v4524_v45 }
 0x2ec   : > { %v1840_v61 = vmul.f32 0.0078125, %v1813_v16  ;;  %v3474_v23 = vpop.eup %3473  ;;  %3487 = vrsqrt.f32 %v1854_v43  ;;  %v1465_v57 = vmul.f32 1.442695, %v4888_v27  ;;  %v2884_v51 = vadd.f32 -1.0, %v3472_v24 }
 0x2ed   : > { %v3476_v1 = vpop.eup %3475  ;;  %3489 = vrsqrt.f32 %v1853_v10  ;;  %v1855_v11 = vadd.f32 1e-05, %v1839_v36  ;;  %v2885_v44 = vadd.f32 -1.0, %v3474_v23  ;;  %vm1438_vm11 = vcmp.gt.f32.partialorder %v4888_v27, 0.0 }
 0x2ee   : > { %v1856_v39 = vadd.f32 1e-05, %v1840_v61  ;;  %v1815_v32 = vpop.xlane.xlu1 %1814  ;;  %3070 = vmatmul.mubr.bf16.vlgmr.msra.gmra.mrb[0].mxu0 %v1524_v46  ;;  %3491 = vpow2.f32 %v1463_v34  ;;  %v4898_v22 = vmul.f32 %v3476_v1, %v4531_v48  ;;  %v3478_v63 = vpop.eup %3477  ;;  %v1467_v48 = vmul.f32 1.442695, %v4894_v50  ;;  %v3356_v61 = vld [vmem:[#allocation8 + $0x98] sm:$0xff]  }
 0x2ef   : > { %v1817_v47 = vpop.xlane.xlu0 %1816  ;;  %3493 = vrsqrt.f32 %v1855_v11  ;;  %v1841_v0 = vmul.f32 0.0078125, %v1815_v32  ;;  %3073 = vmatprep.mubr.bf16.mxu0 %v1525_v37  ;;  %3086 = vmatpush3.bf16.msra.mxu0 %v4833_v9  ;;  %v1498_v45 = vsel %vm1434_vm6, %v4850_v52, %v2885_v44  ;;  %v4908_v21 = vmul.f32 %v3478_v63, %v4534_v54 }
 0x2f0   : > { %v1842_v3 = vmul.f32 0.0078125, %v1817_v47  ;;  %3087 = vmatprep.subr.bf16.mxu0 %v3354_v55  ;;  %3495 = vpow2.f32 %v1465_v57  ;;  %v1469_v9 = vmul.f32 1.442695, %v4898_v22  ;;  %v1497_v46 = vsel %vm1433_vm7, %v4847_v14, %v2884_v51 }
 0x2f1   : > { %v1857_v40 = vadd.f32 1e-05, %v1841_v0  ;;  %v3480_v28 = vpop.eup %3479  ;;  %3497 = vrsqrt.f32 %v1856_v39  ;;  %v1526_v24 = vpack.c.bf16 %v1498_v45, %v1497_v46  ;;  %v1471_v14 = vmul.f32 1.442695, %v4908_v21  ;;  %v3357_v0 = vld [vmem:[#allocation8 + $0xa0] sm:$0xff]  }
 0x2f2   : > { %v1858_v13 = vadd.f32 1e-05, %v1842_v3  ;;  %v1819_v10 = vpop.xlane.xlu1 %1818  ;;  %v3482_v29 = vpop.eup %3481  ;;  %v4923_v3 = vmul.f32 %v3480_v28, %v4543_v56  ;;  %vm1439_vm12 = vcmp.gt.f32.partialorder %v4894_v50, 0.0  ;;  %vm1440_vm13 = vcmp.gt.f32.partialorder %v4898_v22, 0.0 }
 0x2f3   : > { %v1821_v43 = vpop.xlane.xlu0 %1820  ;;  %3499 = vrsqrt.f32 %v1857_v40  ;;  %v1843_v52 = vmul.f32 0.0078125, %v1819_v10  ;;  %3088 = vmatpush3.bf16.msra.mxu0 %v3354_v55  ;;  %v2886_v36 = vadd.f32 -1.0, %v3482_v29  ;;  %vm1441_vm14 = vcmp.gt.f32.partialorder %v4908_v21, 0.0 }
 0x2f4   : > { %v1844_v16 = vmul.f32 0.0078125, %v1821_v43  ;;  %v3484_v5 = vpop.eup %3483  ;;  %3501 = vrsqrt.f32 %v1858_v13  ;;  %3089 = vmatprep.subr.bf16.mxu0 %v3355_v17  ;;  %vm1442_vm15 = vcmp.gt.f32.partialorder %v4923_v3, 0.0 }
 0x2f5   : > { %v3486_v8 = vpop.eup %3485  ;;  %v1859_v23 = vadd.f32 1e-05, %v1843_v52  ;;  %v2887_v54 = vadd.f32 -1.0, %v3484_v5  ;;  %3503 = vpow2.f32 %v1467_v48  ;;  %v1499_v57 = vsel %vm1435_vm8, %v4865_v2, %v2886_v36  ;;  %v3358_v52 = vld [vmem:[#allocation8 + $0xa8] sm:$0xff]  }
 0x2f6   : > { %v1860_v37 = vadd.f32 1e-05, %v1844_v16  ;;  %v3488_v34 = vpop.eup %3487  ;;  %v1823_v1 = vpop.xlane.xlu1 %1822  ;;  %3074 = vmatmul.mubr.bf16.gmra.mrb[4].mxu0 %v1526_v24  ;;  %3505 = vpow2.f32 %v1469_v9  ;;  %v4930_v2 = vmul.f32 %v3486_v8, %v4546_v4  ;;  %v5402_v16 = vld [vmem:[#allocation39_spill] sm:$0xff]  ;;  %v1473_v36 = vmul.f32 1.442695, %v4923_v3 }
 0x2f7   : > { %v1825_v11 = vpop.xlane.xlu0 %1824  ;;  %v3490_v55 = vpop.eup %3489  ;;  %v4916_v44 = vmul.f32 %v3488_v34, %v4559_v15  ;;  %3507 = vrsqrt.f32 %v1859_v23  ;;  %v1845_v39 = vmul.f32 0.0078125, %v1823_v1  ;;  %3090 = vmatpush3.bf16.msra.mxu0 %v3355_v17  ;;  %v1500_v63 = vsel %vm1436_vm9, %v4875_v18, %v2887_v54 }
 0x2f8   : > { %v1846_v32 = vmul.f32 0.0078125, %v1825_v11  ;;  %v3492_v47 = vpop.eup %3491  ;;  %3509 = vrsqrt.f32 %v1860_v37  ;;  %3091 = vmatprep.subr.bf16.mxu0 %v3356_v61  ;;  %v1527_v13 = vpack.c.bf16 %v1500_v63, %v1499_v57  ;;  %v4935_v46 = vmul.f32 %v3490_v55, %v5402_v16 }
 0x2f9   : > { %v3494_v51 = vpop.eup %3493  ;;  %v1920_v15 = vmul.f32 1.442695, %v4916_v44  ;;  %v1861_v45 = vadd.f32 1e-05, %v1845_v39  ;;  %v2888_v43 = vadd.f32 -1.0, %v3492_v47  ;;  %3511 = vpow2.f32 %v1471_v14  ;;  %v3359_v47 = vld [vmem:[#allocation8 + $0xb0] sm:$0xff]  }
 0x2fa   : > { %v1862_v40 = vadd.f32 1e-05, %v1846_v32  ;;  %v4927_v17 = vmul.f32 %v3494_v51, %v4566_v20  ;;  %v1827_v48 = vpop.xlane.xlu1 %1826  ;;  %v3496_v18 = vpop.eup %3495  ;;  %3077 = vmatprep.mubr.bf16.mxu0 %v1527_v13  ;;  %v1916_v34 = vmul.f32 1.442695, %v4930_v2  ;;  %vm1900_vm0 = vcmp.gt.f32.partialorder %v4930_v2, 0.0 }
 0x2fb   : > { %v1829_v10 = vpop.xlane.xlu0 %1828  ;;  %3513 = vpow2.f32 %v1920_v15  ;;  %v1847_v56 = vmul.f32 0.0078125, %v1827_v48  ;;  %3092 = vmatpush3.bf16.msra.mxu0 %v3356_v61  ;;  %v3498_v9 = vpop.eup %3497  ;;  %v2889_v20 = vadd.f32 -1.0, %v3496_v18  ;;  %v1501_v23 = vsel %vm1437_vm10, %v4884_v38, %v2888_v43 }
 0x2fc   : > { %v1848_v28 = vmul.f32 0.0078125, %v1829_v10  ;;  %v1922_v29 = vmul.f32 1.442695, %v4927_v17  ;;  %3515 = vrsqrt.f32 %v1861_v45  ;;  %3093 = vmatprep.subr.bf16.mxu0 %v3357_v0  ;;  %v1918_v38 = vmul.f32 1.442695, %v4935_v46 }
 0x2fd   : > { %v3500_v4 = vpop.eup %3499  ;;  %3517 = vrsqrt.f32 %v1862_v40  ;;  %v1863_v5 = vadd.f32 1e-05, %v1847_v56  ;;  %v1502_v37 = vsel %vm1438_vm11, %v4888_v27, %v2889_v20  ;;  %v4947_v57 = vmul.f32 %v3498_v9, %v4573_v26  ;;  %v3360_v56 = vld [vmem:[#allocation8 + $0xb8] sm:$0xff]  }
 0x2fe   : > { %v1864_v24 = vadd.f32 1e-05, %v1848_v28  ;;  %v3502_v8 = vpop.eup %3501  ;;  %3519 = vpow2.f32 %v1922_v29  ;;  %v1831_v61 = vpop.xlane.xlu1 %1830  ;;  %v1528_v14 = vpack.c.bf16 %v1502_v37, %v1501_v23  ;;  %v4950_v15 = vmul.f32 %v3500_v4, %v4582_v25 }
 0x2ff   : > { %v1833_v54 = vpop.xlane.xlu0 %1832  ;;  %v3504_v1 = vpop.eup %3503  ;;  %3521 = vrsqrt.f32 %v1863_v5  ;;  %v1849_v11 = vmul.f32 0.0078125, %v1831_v61  ;;  %3094 = vmatpush3.bf16.msra.mxu0 %v3357_v0  ;;  %v1924_v28 = vmul.f32 1.442695, %v4947_v57  ;;  %vm1902_vm1 = vcmp.gt.f32.partialorder %v4916_v44, 0.0 }
 0x300   : > { %v1850_v55 = vmul.f32 0.0078125, %v1833_v54  ;;  %v3506_v39 = vpop.eup %3505  ;;  %3523 = vrsqrt.f32 %v1864_v24  ;;  %v2890_v32 = vadd.f32 -1.0, %v3504_v1  ;;  %3095 = vmatprep.subr.bf16.mxu0 %v3358_v52  ;;  %3078 = vmatmul.mubr.bf16.gmra.mrb[8].mxu0 %v1528_v14  ;;  %v1926_v20 = vmul.f32 1.442695, %v4950_v15 }
 0x301   : > { %v3508_v27 = vpop.eup %3507  ;;  %v1865_v63 = vadd.f32 1e-05, %v1849_v11  ;;  %v2891_v51 = vadd.f32 -1.0, %v3506_v39  ;;  %3525 = vpow2.f32 %v1473_v36  ;;  %vm1901_vm2 = vcmp.gt.f32.partialorder %v4935_v46, 0.0 }
 0x302   : > { %v3510_v45 = vpop.eup %3509  ;;  %v1866_v0 = vadd.f32 1e-05, %v1850_v55  ;;  %v1835_v40 = vpop.xlane.xlu1 %1834  ;;  %3527 = vpow2.f32 %v1916_v34  ;;  %v1503_v26 = vsel %vm1439_vm12, %v4894_v50, %v2890_v32  ;;  %v4964_v4 = vmul.f32 %v3508_v27, %v4590_v30 }
 0x303   : > { %v2278_v13 = vpop.xlane.xlu0 %2277  ;;  %v1851_v48 = vmul.f32 0.0078125, %v1835_v40  ;;  %v1504_v10 = vsel %vm1440_vm13, %v4898_v22, %v2891_v51  ;;  %3096 = vmatpush3.bf16.msra.mxu0 %v3358_v52  ;;  %v3512_v18 = vpop.eup %3511  ;;  %3529 = vrsqrt.f32 %v1865_v63  ;;  %v4961_v52 = vmul.f32 %v3502_v8, %v4585_v42  ;;  %v4970_v42 = vld [vmem:[#allocation8 + $0xc0] sm:$0xff]  }
 0x304   : > { %v2309_v43 = vmul.f32 0.0078125, %v2278_v13  ;;  %v1529_v25 = vpack.c.bf16 %v1504_v10, %v1503_v26  ;;  %3097 = vmatprep.subr.bf16.mxu0 %v3359_v47  ;;  %3531 = vpow2.f32 %v1918_v38  ;;  %v2892_v36 = vadd.f32 -1.0, %v3512_v18 }
 0x305   : > { %v3514_v9 = vpop.eup %3513  ;;  %v1867_v29 = vadd.f32 1e-05, %v1851_v48  ;;  %3533 = vpow2.f32 %v1924_v28  ;;  %vm1903_vm3 = vcmp.gt.f32.partialorder %v4927_v17, 0.0  ;;  %v1928_v55 = vmul.f32 1.442695, %v4961_v52 }
 0x306   : > { %v3516_v16 = vpop.eup %3515  ;;  %3081 = vmatprep.mubr.bf16.mxu0 %v1529_v25  ;;  %v2280_v50 = vpop.xlane.xlu1 %2279  ;;  %3535 = vrsqrt.f32 %v1866_v0  ;;  %v2325_v24 = vadd.f32 1e-05, %v2309_v43  ;;  %v2904_v37 = vadd.f32 -1.0, %v3514_v9  ;;  %v1930_v39 = vmul.f32 1.442695, %v4964_v4 }
 0x307   : > { %v2282_v22 = vpop.xlane.xlu0 %2281  ;;  %v4966_v5 = vpop.eup %3517  ;;  %3098 = vmatpush3.bf16.msra.mxu0 %v3359_v47  ;;  %3537 = vrsqrt.f32 %v1867_v29  ;;  %v2310_v30 = vmul.f32 0.0078125, %v2280_v50  ;;  %v4979_v32 = vmul.f32 %v3510_v45, %v4595_v33  ;;  %v1505_v38 = vsel %vm1441_vm14, %v4908_v21, %v2892_v36 }
 0x308   : > { %v2311_v61 = vmul.f32 0.0078125, %v2282_v22  ;;  %v3520_v23 = vpop.eup %3519  ;;  %3099 = vmatprep.subr.bf16.mxu0 %v3360_v56  ;;  %3539 = vpow2.f32 %v1926_v20  ;;  %v4987_v40 = vsel %vm1902_vm1, %v4916_v44, %v2904_v37  ;;  %vm1904_vm4 = vcmp.gt.f32.partialorder %v4947_v57, 0.0 }
 0x309   : > { %v3522_v8 = vpop.eup %3521  ;;  %v2905_v14 = vadd.f32 -1.0, %v3520_v23  ;;  %3541 = vrsqrt.f32 %v2325_v24  ;;  %v4992_v33 = vmul.f32 %v3516_v16, %v4602_v49  ;;  %v2326_v45 = vadd.f32 1e-05, %v2310_v30 }
 0x30a   : > { %v2327_v54 = vadd.f32 1e-05, %v2311_v61  ;;  %v4974_v34 = vpop.eup %3523  ;;  %v2284_v1 = vpop.xlane.xlu1 %2283  ;;  %vm1905_vm5 = vcmp.gt.f32.partialorder %v4950_v15, 0.0  ;;  %v1932_v43 = vmul.f32 1.442695, %v4979_v32  ;;  %v5014_v24 = vmul.f32 %v4966_v5, %v4609_v60 }
 0x30b   : > { %v2286_v11 = vpop.xlane.xlu0 %2285  ;;  %v3526_v47 = vpop.eup %3525  ;;  %v2312_v27 = vmul.f32 0.0078125, %v2284_v1  ;;  %3100 = vmatpush3.bf16.msra.mxu0 %v3360_v56  ;;  %v5003_v10 = vsel %vm1903_vm3, %v4927_v17, %v2905_v14  ;;  %v1934_v16 = vmul.f32 1.442695, %v4992_v33  ;;  %vm1906_vm6 = vcmp.gt.f32.partialorder %v4961_v52, 0.0 }
 0x30c   : > { %v2313_v63 = vmul.f32 0.0078125, %v2286_v11  ;;  %v3528_v51 = vpop.eup %3527  ;;  %v2893_v0 = vadd.f32 -1.0, %v3526_v47  ;;  %3543 = vrsqrt.f32 %v2327_v54  ;;  %3117 = vmatprep.subr.bf16.mxu0 %v4970_v42  ;;  %v5023_v30 = vmul.f32 %v3522_v8, %v4616_v6 }
 0x30d   : > { %v2328_v21 = vadd.f32 1e-05, %v2312_v27  ;;  %v2902_v13 = vadd.f32 -1.0, %v3528_v51  ;;  %3545 = vpow2.f32 %v1928_v55  ;;  %v4995_v48 = vpop.eup %3529  ;;  %vm1907_vm7 = vcmp.gt.f32.partialorder %v4964_v4, 0.0 }
 0x30e   : > { %v1506_v44 = vsel %vm1442_vm15, %v4923_v3, %v2893_v0  ;;  %v2288_v26 = vpop.xlane.xlu1 %2287  ;;  %3547 = vpow2.f32 %v1930_v39  ;;  %v3532_v18 = vpop.eup %3531  ;;  %v2329_v56 = vadd.f32 1e-05, %v2313_v63  ;;  %v1997_v5 = vpack.c.bf16 %v5003_v10, %v4987_v40 }
 0x30f   : > { %v2290_v49 = vpop.xlane.xlu0 %2289  ;;  %v1530_v25 = vpack.c.bf16 %v1506_v44, %v1505_v38  ;;  %3549 = vrsqrt.f32 %v2328_v21  ;;  %v2314_v28 = vmul.f32 0.0078125, %v2288_v26  ;;  %v3534_v9 = vpop.eup %3533  ;;  %v2903_v29 = vadd.f32 -1.0, %v3532_v18 }
 0x310   : > { %v1964_v3 = vsel %vm1900_vm0, %v4930_v2, %v2902_v13  ;;  %v2315_v20 = vmul.f32 0.0078125, %v2290_v49  ;;  %v5010_v17 = vpop.eup %3535  ;;  %v2906_v22 = vadd.f32 -1.0, %v3534_v9  ;;  %3551 = vpow2.f32 %v1932_v43 }
 0x311   : > { %3082 = vmatmul.mubr.bf16.gmra.mrb[12].mxu0 %v1530_v25  ;;  %v2330_v50 = vadd.f32 1e-05, %v2314_v28  ;;  %v5016_v36 = vpop.eup %3537  ;;  %v1965_v61 = vsel %vm1901_vm2, %v4935_v46, %v2903_v29  ;;  %3553 = vpow2.f32 %v1934_v16  ;;  %vm1908_vm8 = vcmp.gt.f32.partialorder %v4979_v32, 0.0 }
 0x312   : > { %v2331_v2 = vadd.f32 1e-05, %v2315_v20  ;;  %v2292_v23 = vpop.xlane.xlu1 %2291  ;;  %v3540_v54 = vpop.eup %3539  ;;  %3555 = vrsqrt.f32 %v2326_v45  ;;  %v1996_v1 = vpack.c.bf16 %v1965_v61, %v1964_v3  ;;  %v1968_v6 = vsel %vm1904_vm4, %v4947_v57, %v2906_v22  ;;  %v3362_v45 = vld [vmem:[#allocation8 + $0xc8] sm:$0xff]  }
 0x313   : > { %v2294_v37 = vpop.xlane.xlu0 %2293  ;;  %v2316_v60 = vmul.f32 0.0078125, %v2292_v23  ;;  %3557 = vrsqrt.f32 %v2329_v56  ;;  %v2907_v46 = vadd.f32 -1.0, %v3540_v54  ;;  %v5028_v14 = vpop.eup %3541  ;;  %v1936_v8 = vmul.f32 1.442695, %v5014_v24  ;;  %v3364_v54 = vld [vmem:[#allocation8 + $0xd8] sm:$0xff]  }
 0x314   : > { %v2317_v11 = vmul.f32 0.0078125, %v2294_v37  ;;  %3101 = vmatprep.mubr.bf16.mxu0 %v1996_v1  ;;  %3559 = vrsqrt.f32 %v2330_v50  ;;  %vm1909_vm9 = vcmp.gt.f32.partialorder %v4992_v33, 0.0  ;;  %v1938_v51 = vmul.f32 1.442695, %v5023_v30 }
 0x315   : > { %v2332_v55 = vadd.f32 1e-05, %v2316_v60  ;;  %3561 = vrsqrt.f32 %v2331_v2  ;;  %v1969_v47 = vsel %vm1905_vm5, %v4950_v15, %v2907_v46  ;;  %v5045_v15 = vmul.f32 %v4974_v34, %v4619_v58  ;;  %v5403_v60 = vld [vmem:[#allocation13_spill] sm:$0xff] }
 0x316   : > { %v3544_v39 = vpop.eup %3543  ;;  %v2333_v38 = vadd.f32 1e-05, %v2317_v11  ;;  %v2296_v27 = vpop.xlane.xlu1 %2295  ;;  %v1998_v40 = vpack.c.bf16 %v1969_v47, %v1968_v6  ;;  %v5054_v58 = vmul.f32 %v4995_v48, %v4625_v53  ;;  %v5070_v2 = vmul.f32 %v5010_v17, %v4632_v41 }
 0x317   : > { %v2298_v63 = vpop.xlane.xlu0 %2297  ;;  %v3546_v0 = vpop.eup %3545  ;;  %v5041_v57 = vmul.f32 %v3544_v39, %v4652_v12  ;;  %3563 = vrsqrt.f32 %v2332_v55  ;;  %v2318_v21 = vmul.f32 0.0078125, %v2296_v27  ;;  %v1940_v22 = vmul.f32 1.442695, %v5045_v15 }
 0x318   : > { %v3548_v13 = vpop.eup %3547  ;;  %3565 = vrsqrt.f32 %v2333_v38  ;;  %v2908_v44 = vadd.f32 -1.0, %v3546_v0  ;;  %v2319_v26 = vmul.f32 0.0078125, %v2298_v63  ;;  %v5077_v1 = vmul.f32 %v5016_v36, %v4640_v59  ;;  %v5405_v38 = vld [vmem:[#allocation14_spill] sm:$0xff]  ;;  %v5406_v63 = vld [vmem:[#allocation15_spill] sm:$0xff] }
 0x319   : > { %v3550_v10 = vpop.eup %3549  ;;  %v2393_v49 = vmul.f32 1.442695, %v5041_v57  ;;  %3102 = vmatmul.mubr.bf16.vlgmr.msra.gmra.mrb[0].mxu0 %v1997_v5  ;;  %v2334_v43 = vadd.f32 1e-05, %v2318_v21  ;;  %v2909_v18 = vadd.f32 -1.0, %v3548_v13  ;;  %3567 = vpow2.f32 %v1936_v8  ;;  %v5408_v13 = vld [vmem:[#allocation17_spill] sm:$0xff] }
 0x31a   : > { %v5049_v12 = vmul.f32 %v3550_v10, %v4662_v35  ;;  %3118 = vmatpush3.bf16.msra.mxu0 %v4970_v42  ;;  %3105 = vmatprep.mubr.bf16.mxu0 %v1998_v40  ;;  %v2335_v25 = vadd.f32 1e-05, %v2319_v26  ;;  %v2300_v56 = vpop.xlane.xlu1 %2299  ;;  %3569 = vpow2.f32 %v1938_v51  ;;  %v3552_v34 = vpop.eup %3551  ;;  %v1970_v28 = vsel %vm1906_vm6, %v4961_v52, %v2908_v44  ;;  %v3363_v42 = vld [vmem:[#allocation8 + $0xd0] sm:$0xff]  }
 0x31b   : > { %3571 = vpow2.f32 %v2393_v49  ;;  %3119 = vmatprep.subr.bf16.mxu0 %v3362_v45  ;;  %v1971_v35 = vsel %vm1907_vm7, %v4964_v4, %v2909_v18  ;;  %v2320_v9 = vmul.f32 0.0078125, %v2300_v56  ;;  %v3554_v29 = vpop.eup %3553  ;;  %v2910_v53 = vadd.f32 -1.0, %v3552_v34 }
 0x31c   : > { %v2395_v3 = vmul.f32 1.442695, %v5049_v12  ;;  %3573 = vrsqrt.f32 %v2334_v43  ;;  %v1999_v20 = vpack.c.bf16 %v1971_v35, %v1970_v28  ;;  %v3556_v48 = vpop.eup %3555  ;;  %v2911_v50 = vadd.f32 -1.0, %v3554_v29  ;;  %v3366_v28 = vld [vmem:[#allocation8 + $0xe8] sm:$0xff]  }
 0x31d   : > { %3575 = vrsqrt.f32 %v2335_v25  ;;  %v2336_v16 = vadd.f32 1e-05, %v2320_v9  ;;  %v3558_v61 = vpop.eup %3557  ;;  %v1972_v52 = vsel %vm1908_vm8, %v4979_v32, %v2910_v53  ;;  %v1942_v4 = vmul.f32 1.442695, %v5054_v58  ;;  %v5409_v29 = vld [vmem:[#allocation18_spill] sm:$0xff] }
 0x31e   : > { %3577 = vpow2.f32 %v2395_v3  ;;  %3120 = vmatpush3.bf16.msra.mxu0 %v3362_v45  ;;  %v3560_v23 = vpop.eup %3559  ;;  %v1973_v37 = vsel %vm1909_vm9, %v4992_v33, %v2911_v50  ;;  %v5081_v32 = vmul.f32 %v5028_v14, %v5403_v60  ;;  %v1944_v41 = vmul.f32 1.442695, %v5070_v2  ;;  %v5404_v33 = vld [vmem:[#allocation25_spill] sm:$0xff]  ;;  %v5407_v45 = vld [vmem:[#allocation16_spill] sm:$0xff] }
 0x31f   : > { %3121 = vmatprep.subr.bf16.mxu0 %v3363_v42  ;;  %3579 = vrsqrt.f32 %v2336_v16  ;;  %v3562_v5 = vpop.eup %3561  ;;  %v2000_v46 = vpack.c.bf16 %v1973_v37, %v1972_v52  ;;  %v1946_v11 = vmul.f32 1.442695, %v5077_v1  ;;  %v5086_v55 = vmul.f32 %v3556_v48, %v5404_v33  ;;  %v3365_v14 = vld [vmem:[#allocation8 + $0xe0] sm:$0xff]  }
 0x320   : > { %3581 = vpow2.f32 %v1940_v22  ;;  %v2389_v59 = vmul.f32 1.442695, %v5081_v32  ;;  %v5091_v27 = vmul.f32 %v3558_v61, %v5405_v38  ;;  %v5094_v51 = vmul.f32 %v3560_v23, %v5406_v63  ;;  %v3367_v22 = vld [vmem:[#allocation8 + $0xf0] sm:$0xff]   ;;  %v5411_v61 = vld [vmem:[#allocation20_spill] sm:$0xff] }
 0x321   : > { %v3564_v17 = vpop.eup %3563  ;;  %3106 = vmatmul.mubr.bf16.gmra.mrb[4].mxu0 %v1999_v20  ;;  %3583 = vpow2.f32 %v1942_v4  ;;  %v2391_v8 = vmul.f32 1.442695, %v5086_v55  ;;  %v5099_v21 = vmul.f32 %v3562_v5, %v5407_v45  ;;  %vm1910_vm10 = vcmp.gt.f32.partialorder %v5014_v24, 0.0  ;;  %v5412_v4 = vld [vmem:[#allocation21_spill] sm:$0xff] }
 0x322   : > { %v3566_v6 = vpop.eup %3565  ;;  %3122 = vmatpush3.bf16.msra.mxu0 %v3363_v42  ;;  %3109 = vmatprep.mubr.bf16.mxu0 %v2000_v46  ;;  %3585 = vpow2.f32 %v1944_v41  ;;  %v5102_v44 = vmul.f32 %v3564_v17, %v5408_v13  ;;  %vm1911_vm11 = vcmp.gt.f32.partialorder %v5023_v30, 0.0  ;;  %v2397_v18 = vmul.f32 1.442695, %v5091_v27 }
 0x323   : > { %v3568_v36 = vpop.eup %3567  ;;  %3123 = vmatprep.subr.bf16.mxu0 %v3364_v54  ;;  %3587 = vpow2.f32 %v1946_v11  ;;  %v2399_v25 = vmul.f32 1.442695, %v5094_v51  ;;  %v2401_v42 = vmul.f32 1.442695, %v5099_v21  ;;  %v5113_v3 = vmul.f32 %v3566_v6, %v5409_v29 }
 0x324   : > { %v3570_v39 = vpop.eup %3569  ;;  %v2912_v47 = vadd.f32 -1.0, %v3568_v36  ;;  %3589 = vpow2.f32 %v2389_v59  ;;  %v2403_v9 = vmul.f32 1.442695, %v5102_v44  ;;  %vm1912_vm12 = vcmp.gt.f32.partialorder %v5045_v15, 0.0 }
 0x325   : > { %v5096_v0 = vpop.eup %3571  ;;  %v2913_v40 = vadd.f32 -1.0, %v3570_v39  ;;  %3591 = vpow2.f32 %v2391_v8  ;;  %vm1913_vm13 = vcmp.gt.f32.partialorder %v5054_v58, 0.0  ;;  %vm1914_vm14 = vcmp.gt.f32.partialorder %v5070_v2, 0.0  ;;  %v3368_v39 = vld [vmem:[#allocation8 + $0xf8] sm:$0xff]  }
 0x326   : > { %v3574_v26 = vpop.eup %3573  ;;  %3124 = vmatpush3.bf16.msra.mxu0 %v3364_v54  ;;  %v1974_v49 = vsel %vm1910_vm10, %v5014_v24, %v2912_v47  ;;  %3593 = vpow2.f32 %v2397_v18  ;;  %vm1915_vm15 = vcmp.gt.f32.partialorder %v5077_v1, 0.0  ;;  %v2405_v60 = vmul.f32 1.442695, %v5113_v3 }
 0x327   : > { %v3576_v10 = vpop.eup %3575  ;;  %v1975_v43 = vsel %vm1911_vm11, %v5023_v30, %v2913_v40  ;;  %3125 = vmatprep.subr.bf16.mxu0 %v3365_v14  ;;  %3595 = vpow2.f32 %v2399_v25  ;;  %v5410_v30 = vld [vmem:[#allocation19_spill] sm:$0xff]  ;;  %vm2373_vm0 = vcmp.gt.f32.partialorder %v5081_v32, 0.0  ;;  %vm2374_vm1 = vcmp.gt.f32.partialorder %v5086_v55, 0.0 }
 0x328   : > { %v3578_v56 = vpop.eup %3577  ;;  %v2001_v34 = vpack.c.bf16 %v1975_v43, %v1974_v49  ;;  %v5117_v20 = vmul.f32 %v3574_v26, %v5410_v30  ;;  %3597 = vpow2.f32 %v2403_v9  ;;  %v5123_v52 = vmul.f32 %v3576_v10, %v5411_v61 }
 0x329   : > { %v3580_v35 = vpop.eup %3579  ;;  %3599 = vpow2.f32 %v2401_v42  ;;  %v2929_v36 = vadd.f32 -1.0, %v3578_v56  ;;  %vm2376_vm2 = vcmp.gt.f32.partialorder %v5049_v12, 0.0  ;;  %vm2375_vm3 = vcmp.gt.f32.partialorder %v5041_v57, 0.0 }
 0x32a   : > { %v3582_v24 = vpop.eup %3581  ;;  %3110 = vmatmul.mubr.bf16.gmra.mrb[8].mxu0 %v2001_v34  ;;  %v5126_v23 = vmul.f32 %v3580_v35, %v5412_v4  ;;  %v2407_v5 = vmul.f32 1.442695, %v5117_v20  ;;  %3601 = vpow2.f32 %v2405_v60  ;;  %v2409_v47 = vmul.f32 1.442695, %v5123_v52 }
 0x32b   : > { %v3584_v53 = vpop.eup %3583  ;;  %3126 = vmatpush3.bf16.msra.mxu0 %v3365_v14  ;;  %v2914_v48 = vadd.f32 -1.0, %v3582_v24  ;;  %v2440_v26 = vsel %vm2376_vm2, %v5049_v12, %v2929_v36  ;;  %vm2377_vm4 = vcmp.gt.f32.partialorder %v5091_v27, 0.0  ;;  %vm2378_vm5 = vcmp.gt.f32.partialorder %v5094_v51, 0.0 }
 0x32c   : > { %v3586_v16 = vpop.eup %3585  ;;  %v2915_v50 = vadd.f32 -1.0, %v3584_v53  ;;  %3127 = vmatprep.subr.bf16.mxu0 %v3366_v28  ;;  %3603 = vpow2.f32 %v2407_v5  ;;  %v2411_v38 = vmul.f32 1.442695, %v5126_v23  ;;  %vm2380_vm6 = vcmp.gt.f32.partialorder %v5102_v44, 0.0 }
 0x32d   : > { %v3588_v37 = vpop.eup %3587  ;;  %v2916_v54 = vadd.f32 -1.0, %v3586_v16  ;;  %v1976_v41 = vsel %vm1912_vm12, %v5045_v15, %v2914_v48  ;;  %vm2382_vm7 = vcmp.gt.f32.partialorder %v5117_v20, 0.0  ;;  %vm2379_vm8 = vcmp.gt.f32.partialorder %v5099_v21, 0.0 }
 0x32e   : > { %v3590_v46 = vpop.eup %3589  ;;  %v1977_v17 = vsel %vm1913_vm13, %v5054_v58, %v2915_v50  ;;  %v2917_v11 = vadd.f32 -1.0, %v3588_v37  ;;  %3605 = vpow2.f32 %v2411_v38  ;;  %vm2381_vm9 = vcmp.gt.f32.partialorder %v5113_v3, 0.0 }
 0x32f   : > { %v3592_v33 = vpop.eup %3591  ;;  %v2002_v6 = vpack.c.bf16 %v1977_v17, %v1976_v41  ;;  %3128 = vmatpush3.bf16.msra.mxu0 %v3366_v28  ;;  %v2926_v59 = vadd.f32 -1.0, %v3590_v46  ;;  %v1978_v14 = vsel %vm1914_vm14, %v5070_v2, %v2916_v54  ;;  %3607 = vpow2.f32 %v2409_v47 }
 0x330   : > { %v1979_v15 = vsel %vm1915_vm15, %v5077_v1, %v2917_v11  ;;  %3129 = vmatprep.subr.bf16.mxu0 %v3367_v22  ;;  %v2927_v8 = vadd.f32 -1.0, %v3592_v33  ;;  %v2928_v1 = vadd.f32 -1.0, %v5096_v0  ;;  %v3594_v40 = vpop.eup %3593  ;;  %vm2384_vm10 = vcmp.gt.f32.partialorder %v5126_v23, 0.0 }
 0x331   : > { %3113 = vmatprep.mubr.bf16.mxu0 %v2002_v6  ;;  %v2003_v58 = vpack.c.bf16 %v1979_v15, %v1978_v14  ;;  %v2437_v2 = vsel %vm2373_vm0, %v5081_v32, %v2926_v59  ;;  %v3596_v13 = vpop.eup %3595  ;;  %v2930_v10 = vadd.f32 -1.0, %v3594_v40  ;;  %vm2383_vm11 = vcmp.gt.f32.partialorder %v5123_v52, 0.0 }
 0x332   : > { %v2438_v63 = vsel %vm2374_vm1, %v5086_v55, %v2927_v8  ;;  %v2931_v32 = vadd.f32 -1.0, %v3596_v13  ;;  %v3598_v55 = vpop.eup %3597  ;;  %v2439_v0 = vsel %vm2375_vm3, %v5041_v57, %v2928_v1 }
 0x333   : > { %3114 = vmatmul.mubr.bf16.gmra.mrb[12].mxu0 %v2003_v58  ;;  %v2469_v45 = vpack.c.bf16 %v2438_v63, %v2437_v2  ;;  %v3600_v49 = vpop.eup %3599  ;;  %v2470_v43 = vpack.c.bf16 %v2440_v26, %v2439_v0  ;;  %v2441_v18 = vsel %vm2377_vm4, %v5091_v27, %v2930_v10  ;;  %v2933_v56 = vadd.f32 -1.0, %v3598_v55  ;;  %v5178_v55 = vld [vmem:[%s5287_s4] ss:$0 sm:$0xff]  ;;  %v3625_v0 = vld [vmem:[%s4020_s6 + $0x10] sm:$0xff] }
 0x334   : > { %3130 = vmatpush3.bf16.msra.mxu0 %v3367_v22  ;;  %v2442_v12 = vsel %vm2378_vm5, %v5094_v51, %v2931_v32  ;;  %v3602_v34 = vpop.eup %3601  ;;  %v2932_v35 = vadd.f32 -1.0, %v3600_v49  ;;  %v748_v49 = vadd.f32 %v3625_v0, %v5178_v55 }
 0x335   : > { %3131 = vmatprep.subr.bf16.mxu0 %v3368_v39  ;;  %3133 = vmatprep.mubr.bf16.mxu0 %v2469_v45  ;;  %v2471_v25 = vpack.c.bf16 %v2442_v12, %v2441_v18  ;;  %v2934_v57 = vadd.f32 -1.0, %v3602_v34  ;;  %v2444_v9 = vsel %vm2380_vm6, %v5102_v44, %v2933_v56  ;;  %v3627_v12 = vld [vmem:[%s4020_s6 + $0x18] sm:$0xff]  ;;  %v3628_v34 = vld [vmem:[%s4020_s6 + $0x8] sm:$0xff] }
 0x336   : > { %v3604_v28 = vpop.eup %3603  ;;  %v2443_v51 = vsel %vm2379_vm8, %v5099_v21, %v2932_v35 }
 0x337   : > { %v2935_v42 = vadd.f32 -1.0, %v3604_v28  ;;  %v2472_v30 = vpack.c.bf16 %v2444_v9, %v2443_v51  ;;  %v2445_v53 = vsel %vm2381_vm9, %v5113_v3, %v2934_v57  ;;  %v747_v28 = vadd.f32 %v3628_v34, %v5178_v55 }
 0x338   : > { %3132 = vmatpush3.bf16.msra.mxu0 %v3368_v39  ;;  %v3606_v29 = vpop.eup %3605 }
 0x339   : > { %v2446_v27 = vsel %vm2382_vm7, %v5117_v20, %v2935_v42  ;;  %v3608_v24 = vpop.eup %3607  ;;  %v2937_v16 = vadd.f32 -1.0, %v3606_v29 }
 0x33a   : > { %v2473_v48 = vpack.c.bf16 %v2446_v27, %v2445_v53  ;;  %v2936_v50 = vadd.f32 -1.0, %v3608_v24  ;;  %v3629_v24 = vld [vmem:[%s4020_s6 + $0x30] sm:$0xff]  ;;  %v3630_v53 = vld [vmem:[%s4020_s6 + $0x20] sm:$0xff] }
 0x33b   : > { %3134 = vmatmul.mubr.bf16.vlgmr.msra.gmra.mrb[0].mxu0 %v2470_v43  ;;  %v2448_v44 = vsel %vm2384_vm10, %v5126_v23, %v2937_v16  ;;  %v3626_v43 = vld [vmem:[%s4020_s6] sm:$0xff]  ;;  %v3631_v16 = vld [vmem:[%s4020_s6 + $0x38] sm:$0xff] }
 0x33c   : > { %3137 = vmatprep.mubr.bf16.mxu0 %v2471_v25  ;;  %v2447_v20 = vsel %vm2383_vm11, %v5123_v52, %v2936_v50  ;;  %v746_v18 = vadd.f32 %v3626_v43, %v5178_v55  ;;  %v749_v25 = vadd.f32 %v3627_v12, %v5178_v55  ;;  %v753_v50 = vadd.f32 %v3631_v16, %v5178_v55 }
 0x33d   : > { %v2474_v21 = vpack.c.bf16 %v2448_v44, %v2447_v20  ;;  %v3632_v20 = vld [vmem:[%s4020_s6 + $0x28] sm:$0xff] }
 0x343   : > { %3138 = vmatmul.mubr.bf16.gmra.mrb[4].mxu0 %v2472_v30  ;;  %v752_v30 = vadd.f32 %v3629_v24, %v5178_v55 }
 0x344   : > { %3141 = vmatprep.mubr.bf16.mxu0 %v2473_v48  ;;  %v750_v48 = vadd.f32 %v3630_v53, %v5178_v55 }
 0x34b   : > { %3142 = vmatmul.mubr.bf16.gmra.mrb[8].mxu0 %v2474_v21  ;;  %v751_v21 = vadd.f32 %v3632_v20, %v5178_v55 }
 0x35f   : > { %v2302_v22 = vpop.xlane.xlu0 %2301 }
 0x360   : > { %v2321_v61 = vmul.f32 0.0078125, %v2302_v22 }
 0x362   : > { %v2337_v4 = vadd.f32 1e-05, %v2321_v61  ;;  %v2304_v37 = vpop.xlane.xlu1 %2303 }
 0x363   : > { %v2306_v3 = vpop.xlane.xlu0 %2305  ;;  %v2322_v54 = vmul.f32 0.0078125, %v2304_v37 }
 0x364   : > { %3609 = vrsqrt.f32 %v2337_v4  ;;  %v2323_v60 = vmul.f32 0.0078125, %v2306_v3 }
 0x365   : > { %v2338_v5 = vadd.f32 1e-05, %v2322_v54 }
 0x366   : > { %v2339_v46 = vadd.f32 1e-05, %v2323_v60  ;;  %v2308_v41 = vpop.xlane.xlu1 %2307 }
 0x367   : > { %3611 = vrsqrt.f32 %v2338_v5  ;;  %v2324_v17 = vmul.f32 0.0078125, %v2308_v41  ;;  %v3633_v5 = vld [vmem:[%s4020_s6 + $0x50] sm:$0xff]  ;;  %v3634_v41 = vld [vmem:[%s4020_s6 + $0x40] sm:$0xff] }
 0x368   : > { %3613 = vrsqrt.f32 %v2339_v46  ;;  %v756_v46 = vadd.f32 %v3633_v5, %v5178_v55 }
 0x369   : > { %v2340_v23 = vadd.f32 1e-05, %v2324_v17  ;;  %v754_v17 = vadd.f32 %v3634_v41, %v5178_v55 }
 0x36b   : > { %3615 = vrsqrt.f32 %v2340_v23  ;;  %v3635_v23 = vld [vmem:[%s4020_s6 + $0x58] sm:$0xff] }
 0x36e   : > { %v3610_v11 = vpop.eup %3609 }
 0x36f   : > { %v2369_v52 = vmul.f32 %v3610_v11, %v4800_v62  ;;  %v757_v11 = vadd.f32 %v3635_v23, %v5178_v55 }
 0x371   : > { %v2413_v33 = vmul.f32 1.442695, %v2369_v52  ;;  %v3612_v6 = vpop.eup %3611  ;;  %vm2385_vm12 = vcmp.gt.f32.partialorder %v2369_v52, 0.0 }
 0x372   : > { %v3614_v59 = vpop.eup %3613  ;;  %v2370_v36 = vmul.f32 %v3612_v6, %v4810_v31 }
 0x373   : > { %3617 = vpow2.f32 %v2413_v33  ;;  %v2371_v14 = vmul.f32 %v3614_v59, %v4813_v7  ;;  %v3636_v33 = vld [vmem:[%s4020_s6 + $0x48] sm:$0xff] }
 0x374   : > { %v2415_v15 = vmul.f32 1.442695, %v2370_v36  ;;  %vm2386_vm13 = vcmp.gt.f32.partialorder %v2370_v36, 0.0  ;;  %v755_v6 = vadd.f32 %v3636_v33, %v5178_v55 }
 0x375   : > { %v3616_v8 = vpop.eup %3615  ;;  %v2417_v58 = vmul.f32 1.442695, %v2371_v14  ;;  %vm2387_vm14 = vcmp.gt.f32.partialorder %v2371_v14, 0.0 }
 0x376   : > { %3619 = vpow2.f32 %v2415_v15  ;;  %v2372_v39 = vmul.f32 %v3616_v8, %v4831_v19 }
 0x377   : > { %3621 = vpow2.f32 %v2417_v58 }
 0x378   : > { %v2419_v47 = vmul.f32 1.442695, %v2372_v39  ;;  %vm2388_vm15 = vcmp.gt.f32.partialorder %v2372_v39, 0.0 }
 0x37a   : > { %3623 = vpow2.f32 %v2419_v47  ;;  %v3637_v47 = vld [vmem:[%s4020_s6 + $0x70] sm:$0xff] }
 0x37d   : > { %v3618_v38 = vpop.eup %3617 }
 0x37e   : > { %v2938_v2 = vadd.f32 -1.0, %v3618_v38  ;;  %v760_v38 = vadd.f32 %v3637_v47, %v5178_v55 }
 0x380   : > { %v3620_v62 = vpop.eup %3619  ;;  %v2449_v31 = vsel %vm2385_vm12, %v2369_v52, %v2938_v2  ;;  %v3638_v2 = vld [vmem:[%s4020_s6 + $0x60] sm:$0xff] }
 0x381   : > { %v3622_v63 = vpop.eup %3621  ;;  %v2939_v1 = vadd.f32 -1.0, %v3620_v62  ;;  %v758_v62 = vadd.f32 %v3638_v2, %v5178_v55 }
 0x382   : > { %v2940_v40 = vadd.f32 -1.0, %v3622_v63  ;;  %v3639_v63 = vld [vmem:[%s4020_s6 + $0x78] sm:$0xff] }
 0x383   : > { %v2450_v7 = vsel %vm2386_vm13, %v2370_v36, %v2939_v1  ;;  %v761_v1 = vadd.f32 %v3639_v63, %v5178_v55 }
 0x384   : > { %v3624_v45 = vpop.eup %3623  ;;  %v2475_v13 = vpack.c.bf16 %v2450_v7, %v2449_v31  ;;  %v2451_v19 = vsel %vm2387_vm14, %v2371_v14, %v2940_v40  ;;  %v3640_v7 = vld [vmem:[%s4020_s6 + $0x68] sm:$0xff] }
 0x385   : > { %v2941_v26 = vadd.f32 -1.0, %v3624_v45  ;;  %v759_v40 = vadd.f32 %v3640_v7, %v5178_v55 }
 0x386   : > { %3145 = vmatprep.mubr.bf16.mxu0 %v2475_v13 }
 0x387   : > { %v2452_v10 = vsel %vm2388_vm15, %v2372_v39, %v2941_v26 }
 0x388   : > { %v2476_v32 = vpack.c.bf16 %v2452_v10, %v2451_v19 }
 0x38a   : > { %3146 = vmatmul.mubr.bf16.gmra.mrb[12].mxu0 %v2476_v32 }
 0x40e   : > { %v3135_v56 = vpop.f32.mrb[0].mxu0 }
 0x40f   : > { %v3149_v35 = vadd.f32 %v3135_v56, %v748_v49  ;;  %v2575_v57 = vpop.f32.mrb[1].mxu0 }
 0x410   : > { %v3150_v42 = vadd.f32 %v2575_v57, %v746_v18  ;;  %v3136_v9 = vpop.f32.mrb[2].mxu0 }
 0x411   : > { %2688 = vst [vmem:[%s5190_s12 + $0x10] sm:$0xff] %v3149_v35  ;;  %v3151_v29 = vadd.f32 %v3136_v9, %v749_v25  ;;  %v2578_v27 = vpop.f32.mrb[3].mxu0 }
 0x412   : > { %2686 = vst [vmem:[%s5190_s12] sm:$0xff] %v3150_v42  ;;  %v3152_v51 = vadd.f32 %v2578_v27, %v747_v28 }
 0x413   : > { %2689 = vst [vmem:[%s5190_s12 + $0x18] sm:$0xff] %v3151_v29 }
 0x414   : > { %2687 = vst [vmem:[%s5190_s12 + $0x8] sm:$0xff] %v3152_v51 }
 0x416   : > { %v3139_v44 = vpop.f32.mrb[4].mxu0 }
 0x417   : > { %v3153_v22 = vadd.f32 %v3139_v44, %v752_v30  ;;  %v2591_v61 = vpop.f32.mrb[5].mxu0 }
 0x418   : > { %v3154_v4 = vadd.f32 %v2591_v61, %v750_v48  ;;  %v3140_v37 = vpop.f32.mrb[6].mxu0 }
 0x419   : > { %2692 = vst [vmem:[%s5190_s12 + $0x30] sm:$0xff] %v3153_v22  ;;  %v3155_v3 = vadd.f32 %v3140_v37, %v753_v50  ;;  %v2594_v54 = vpop.f32.mrb[7].mxu0 }
 0x41a   : > { %2690 = vst [vmem:[%s5190_s12 + $0x20] sm:$0xff] %v3154_v4  ;;  %v3156_v60 = vadd.f32 %v2594_v54, %v751_v21 }
 0x41b   : > { %2693 = vst [vmem:[%s5190_s12 + $0x38] sm:$0xff] %v3155_v3 }
 0x41c   : > { %2691 = vst [vmem:[%s5190_s12 + $0x28] sm:$0xff] %v3156_v60 }
 0x41e   : > { %v3143_v52 = vpop.f32.mrb[8].mxu0 }
 0x41f   : > { %v3157_v59 = vadd.f32 %v3143_v52, %v756_v46  ;;  %v2607_v36 = vpop.f32.mrb[9].mxu0 }
 0x420   : > { %v3158_v14 = vadd.f32 %v2607_v36, %v754_v17  ;;  %v3144_v15 = vpop.f32.mrb[10].mxu0 }
 0x421   : > { %2696 = vst [vmem:[%s5190_s12 + $0x50] sm:$0xff] %v3157_v59  ;;  %v3159_v8 = vadd.f32 %v3144_v15, %v757_v11  ;;  %v2610_v58 = vpop.f32.mrb[11].mxu0 }
 0x422   : > { %2694 = vst [vmem:[%s5190_s12 + $0x40] sm:$0xff] %v3158_v14  ;;  %v3160_v39 = vadd.f32 %v2610_v58, %v755_v6 }
 0x423   : > { %2697 = vst [vmem:[%s5190_s12 + $0x58] sm:$0xff] %v3159_v8 }
 0x424   : > { %2695 = vst [vmem:[%s5190_s12 + $0x48] sm:$0xff] %v3160_v39 }
 0x45d   : > { %v3147_v31 = vpop.f32.mrb[12].mxu0 }
 0x45e   : > { %v3161_v45 = vadd.f32 %v3147_v31, %v760_v38  ;;  %v2623_v13 = vpop.f32.mrb[13].mxu0 }
 0x45f   : > { %v3162_v26 = vadd.f32 %v2623_v13, %v758_v62  ;;  %v3148_v19 = vpop.f32.mrb[14].mxu0 }
 0x460   : > { %2700 = vst [vmem:[%s5190_s12 + $0x70] sm:$0xff] %v3161_v45  ;;  %v3163_v10 = vadd.f32 %v3148_v19, %v761_v1  ;;  %v2626_v32 = vpop.f32.mrb[15].mxu0 }
 0x461   : > { %2698 = vst [vmem:[%s5190_s12 + $0x60] sm:$0xff] %v3162_v26  ;;  %v3164_v55 = vadd.f32 %v2626_v32, %v759_v40 }
 0x462   : > { %2701 = vst [vmem:[%s5190_s12 + $0x78] sm:$0xff] %v3163_v10 }
 0x463   : > { %2699 = vst [vmem:[%s5190_s12 + $0x68] sm:$0xff] %v3164_v55 }
 0x464   : > { %3740 = shalt.err (!%p3737_p2)
}
 0x465   : > { %s3741_s6 = scalar_lea.hbm %s5234_s11, 2048  ;;  %s3745_s10 = scalar_lea.hbm %s5288_s5, 4096 }
 0x466   : > { %p3742_p13 = scmp.ne.s32.totalorder %s5234_s11, %s3741_s6  ;;  %p3746_p4 = scmp.lt.u32.totalorder %s5234_s11, %s5288_s5 }
 0x467   : > { %p3747_p7 = scmp.lt.u32.totalorder %s3745_s10, %s3741_s6  ;;  %p3749_p11 = scmp.lt.u32.totalorder %s3741_s6, %s5234_s11 }
 0x468   : > { %p3743_p6 = pnand %p3742_p13, %p5413_p0 }
 0x469   : > { %p3748_p8 = por %p3747_p7, %p3746_p4 }
 0x46a   : > { %p3744_p10 = pneg %p3743_p6 }
 0x46b   : > { %p3750_p1 = por %p3749_p11, %p3748_p8 }
 0x46d   : > { %p3751_p3 = pnand %p3750_p1, %p3744_p10 }
 0x46f   : > { %3754 = shalt.err (!%p3751_p3)
}
 0x470   : > { %s3810_s13 = smov 128   ;;  %s3811_s8 = smov 8  }
 0x471   : > { %3223 = dma.vmem_to_hbm [thread:$0]  (%p5413_p0), %s5236_s29, 2048, %s5234_s11, %s2703_s22, %s3810_s13, %s3810_s13, %s3811_s8  }
 0x472 PF: > { %s2731_s9 = sand.u32 1, %s3785_s18   ;;  %p5414_p5 = scmp.ne.s32.totalorder %s5330_s25, 0 }
 0x473   : > { %p5415_p9 = scmp.ge.s32.totalorder %s3797_s21, 2  ;;  %s2732_s14 = scalar_lea.sflag [#allocation5], %s2731_s9 }
 0x475   : > { %p3237_p12 = pnand %p5415_p9, %p5414_p5 }
 0x477   : > { %3780 = dma.done.wait (!%p3237_p12), %s2732_s14, 2048  }
 0x478   : > { %3782 = vsyncadd (!%p3237_p12), %s2732_s14, 4294965248  ;;  %p19_p2 = scmp.ge.s32.totalorder %s3952_s16, 4   ;;  %s5416_s18 = smov %s3789_s19 }
 0x479   : > { %s5417_s19 = smov %s3793_s20  ;;  %s5418_s20 = smov %s3961_s27 }
 0x47a   : > { %s5419_s21 = smov %s3952_s16  ;;  %21 = sbr.rel (!%p19_p2) target bundleno = 6 (0x6), region = 93 }
 0x481   :  { %2737 = vsyncpa [#allocation4], 1 }
 0x482   :  { %2739 = vsyncpa [#allocation4 + $0x1], 1 }
 0x483   :  { %2740 = vsyncpa [#allocation7], 1 }
 0x484   :  { %2741 = vsyncpa [#allocation5], 1 }
 0x485   :  { %2743 = vsyncpa [#allocation5 + $0x1], 1 }

</bundles_post_ra>
